<compile_context>
chip_gen: v7x
topology: tpu7x:2x2x1
jax: 0.10.0
libtpu: 0.0.40
codegen_flags: <defaults>
</compile_context>

<pallas_src>
import jax
import jax.numpy as jnp
from jax.experimental import pallas as pl
from jax.experimental.pallas import tpu as pltpu


def _transe_kernel(heads_ref, rels_ref, tails_ref,   # SMEM int32 [B_padded] (scalar prefetch)
                   ent_hbm, rel_hbm,                  # HBM f32 [E, D] / [R, D]  (pl.ANY)
                   out_ref,                           # VMEM f32 [TB, D]  (pipelined output tile)
                   h_buf, r_buf, t_buf,               # VMEM f32 [TB, D]  gather slabs
                   sems):                             # DMA semaphores (3, TB)
    tb = out_ref.shape[0]
    base = pl.program_id(0) * tb

    # Issue all row-gather DMAs for this block.  Index reads (SMEM) happen
    # before any DMA wait; all 3*TB small gathers stay in flight together.
    copies = []
    for i in range(tb):
        h = heads_ref[base + i]
        r = rels_ref[base + i]
        t = tails_ref[base + i]
        ch = pltpu.make_async_copy(ent_hbm.at[pl.ds(h, 1)],
                                   h_buf.at[pl.ds(i, 1)], sems.at[0, i])
        cr = pltpu.make_async_copy(rel_hbm.at[pl.ds(r, 1)],
                                   r_buf.at[pl.ds(i, 1)], sems.at[1, i])
        ct = pltpu.make_async_copy(ent_hbm.at[pl.ds(t, 1)],
                                   t_buf.at[pl.ds(i, 1)], sems.at[2, i])
        ch.start()
        cr.start()
        ct.start()
        copies += [ch, cr, ct]

    for c in copies:
        c.wait()

    # One vectorized combine + lane-dense store for the whole (TB, D) tile.
    out_ref[...] = h_buf[...] + r_buf[...] - t_buf[...]


def transe_forward(heads, relations, tails, entity_emb, relation_emb,
                   *, block_rows=8):
    """heads/relations/tails: int [B]; entity_emb: [E, D]; relation_emb: [R, D].

    D must be a multiple of 128 (pad tables/output in the caller otherwise).
    """
    batch = heads.shape[0]
    emb_dim = entity_emb.shape[1]
    assert emb_dim % 128 == 0, "pad embedding_dim to a multiple of 128 lanes"

    tb = block_rows
    assert tb % 8 == 0, "block_rows must be a multiple of 8 (sublane-dense)"

    padded = ((batch + tb - 1) // tb) * tb
    pad = padded - batch
    heads = heads.astype(jnp.int32)
    relations = relations.astype(jnp.int32)
    tails = tails.astype(jnp.int32)
    if pad:
        zeros = jnp.zeros((pad,), dtype=jnp.int32)
        heads = jnp.concatenate([heads, zeros])
        relations = jnp.concatenate([relations, zeros])
        tails = jnp.concatenate([tails, zeros])

    out = pl.pallas_call(
        _transe_kernel,
        out_shape=jax.ShapeDtypeStruct((padded, emb_dim), entity_emb.dtype),
        grid_spec=pltpu.PrefetchScalarGridSpec(
            num_scalar_prefetch=3,                 # heads, relations, tails -> SMEM
            grid=(padded // tb,),
            in_specs=[
                pl.BlockSpec(memory_space=pl.ANY),   # entity table: stays in HBM
                pl.BlockSpec(memory_space=pl.ANY),   # relation table: stays in HBM
            ],
            out_specs=pl.BlockSpec((tb, emb_dim), lambda b, h, r, t: (b, 0)),
            scratch_shapes=[
                pltpu.VMEM((tb, emb_dim), entity_emb.dtype),   # head rows
                pltpu.VMEM((tb, emb_dim), entity_emb.dtype),   # relation rows
                pltpu.VMEM((tb, emb_dim), entity_emb.dtype),   # tail rows
                pltpu.SemaphoreType.DMA((3, tb)),
            ],
        ),
        compiler_params=pltpu.CompilerParams(
            dimension_semantics=("parallel",),     # independent batch blocks
        ),
    )(heads, relations, tails, entity_emb, relation_emb)

    return out[:batch] if pad else out


if __name__ == "__main__":
    # Small, deterministic problem sizes (the module's degenerate
    # num_entities/num_relations are replaced with sensible small values).
    num_entities = 64
    num_relations = 16
    embedding_dim = 128
    batch = 16            # two grid steps with block_rows=8

    key = jax.random.PRNGKey(0)
    k_ent, k_rel, k_h, k_r, k_t = jax.random.split(key, 5)

    # nn.Embedding default init: N(0, 1)
    entity_emb = jax.random.normal(k_ent, (num_entities, embedding_dim),
                                   dtype=jnp.float32)
    relation_emb = jax.random.normal(k_rel, (num_relations, embedding_dim),
                                     dtype=jnp.float32)

    heads = jax.random.randint(k_h, (batch,), 0, num_entities, dtype=jnp.int32)
    rels = jax.random.randint(k_r, (batch,), 0, num_relations, dtype=jnp.int32)
    tails = jax.random.randint(k_t, (batch,), 0, num_entities, dtype=jnp.int32)

    out = transe_forward(heads, rels, tails, entity_emb, relation_emb,
                         block_rows=8)
    out = jax.block_until_ready(out)

    # Reference check (plain JAX) — same semantics as the PyTorch forward.
    ref = entity_emb[heads] + relation_emb[rels] - entity_emb[tails]
    assert out.shape == (batch, embedding_dim)
    assert jnp.allclose(out, ref, atol=1e-6), "mismatch vs reference"

    # TODO(synk): no in-kernel bounds clamp on indices; OOB indices will fault
    # at the DMA rather than silently read garbage (acceptable for training data).

    print("KERNEL_OK")
</pallas_src>

<mosaic_0001>
module attributes {stable_mosaic.version = 11 : i64} {
  func.func @_transe_kernel(%arg0: i32, %arg1: memref<16xi32, #tpu.memory_space<smem>>, %arg2: memref<16xi32, #tpu.memory_space<smem>>, %arg3: memref<16xi32, #tpu.memory_space<smem>>, %arg4: memref<64x128xf32, #tpu.memory_space<any>>, %arg5: memref<16x128xf32, #tpu.memory_space<any>>, %arg6: memref<8x128xf32, #tpu.memory_space<vmem>>, %arg7: memref<8x128xf32, #tpu.memory_space<vmem>>, %arg8: memref<8x128xf32, #tpu.memory_space<vmem>>, %arg9: memref<8x128xf32, #tpu.memory_space<vmem>>, %arg10: memref<3x8x!tpu.dma_semaphore, #tpu.memory_space<semaphore_mem>>) attributes {dimension_semantics = [#tpu.dimension_semantics<parallel>], iteration_bounds = array<i64: 2>, scalar_prefetch = 3 : i64, scratch_operands = 4 : i64, tpu.core_type = #tpu.core_type<tc>, window_params = [{}, {}, {transform_indices = @transform_2, window_bounds = array<i64: 8, 128>}]} {
    %c8_i32 = arith.constant 8 : i32
    %0 = arith.muli %arg0, %c8_i32 : i32
    %c0_i32 = arith.constant 0 : i32
    %1 = arith.addi %0, %c0_i32 : i32
    %2 = arith.index_cast %1 : i32 to index
    %3 = memref.load %arg1[%2] : memref<16xi32, #tpu.memory_space<smem>>
    %c0_i32_0 = arith.constant 0 : i32
    %4 = arith.addi %0, %c0_i32_0 : i32
    %5 = arith.index_cast %4 : i32 to index
    %6 = memref.load %arg2[%5] : memref<16xi32, #tpu.memory_space<smem>>
    %c0_i32_1 = arith.constant 0 : i32
    %7 = arith.addi %0, %c0_i32_1 : i32
    %8 = arith.index_cast %7 : i32 to index
    %9 = memref.load %arg3[%8] : memref<16xi32, #tpu.memory_space<smem>>
    %c0_i32_2 = arith.constant 0 : i32
    %c0_i32_3 = arith.constant 0 : i32
    %c0_i32_4 = arith.constant 0 : i32
    %10 = tpu.memref_slice %arg4[%3, %c0_i32_4] : memref<64x128xf32, #tpu.memory_space<any>> -> memref<1x128xf32, #tpu.memory_space<any>>
    %c0_i32_5 = arith.constant 0 : i32
    %c0_i32_6 = arith.constant 0 : i32
    %11 = tpu.memref_slice %arg7[%c0_i32_5, %c0_i32_6] : memref<8x128xf32, #tpu.memory_space<vmem>> -> memref<1x128xf32, #tpu.memory_space<vmem>>
    %12 = tpu.memref_slice %arg10[%c0_i32_2, %c0_i32_3] : memref<3x8x!tpu.dma_semaphore, #tpu.memory_space<semaphore_mem>> -> memref<1x1x!tpu.dma_semaphore, #tpu.memory_space<semaphore_mem>>
    %13 = tpu.memref_squeeze %12 : memref<1x1x!tpu.dma_semaphore, #tpu.memory_space<semaphore_mem>> -> memref<!tpu.dma_semaphore, #tpu.memory_space<semaphore_mem>>
    tpu.enqueue_dma source(%10 : memref<1x128xf32, #tpu.memory_space<any>>) target(%11 : memref<1x128xf32, #tpu.memory_space<vmem>>) target_semaphore(%13 : memref<!tpu.dma_semaphore, #tpu.memory_space<semaphore_mem>>)
    %c1_i32 = arith.constant 1 : i32
    %c0_i32_7 = arith.constant 0 : i32
    %c0_i32_8 = arith.constant 0 : i32
    %14 = tpu.memref_slice %arg5[%6, %c0_i32_8] : memref<16x128xf32, #tpu.memory_space<any>> -> memref<1x128xf32, #tpu.memory_space<any>>
    %c0_i32_9 = arith.constant 0 : i32
    %c0_i32_10 = arith.constant 0 : i32
    %15 = tpu.memref_slice %arg8[%c0_i32_9, %c0_i32_10] : memref<8x128xf32, #tpu.memory_space<vmem>> -> memref<1x128xf32, #tpu.memory_space<vmem>>
    %16 = tpu.memref_slice %arg10[%c1_i32, %c0_i32_7] : memref<3x8x!tpu.dma_semaphore, #tpu.memory_space<semaphore_mem>> -> memref<1x1x!tpu.dma_semaphore, #tpu.memory_space<semaphore_mem>>
    %17 = tpu.memref_squeeze %16 : memref<1x1x!tpu.dma_semaphore, #tpu.memory_space<semaphore_mem>> -> memref<!tpu.dma_semaphore, #tpu.memory_space<semaphore_mem>>
    tpu.enqueue_dma source(%14 : memref<1x128xf32, #tpu.memory_space<any>>) target(%15 : memref<1x128xf32, #tpu.memory_space<vmem>>) target_semaphore(%17 : memref<!tpu.dma_semaphore, #tpu.memory_space<semaphore_mem>>)
    %c2_i32 = arith.constant 2 : i32
    %c0_i32_11 = arith.constant 0 : i32
    %c0_i32_12 = arith.constant 0 : i32
    %18 = tpu.memref_slice %arg4[%9, %c0_i32_12] : memref<64x128xf32, #tpu.memory_space<any>> -> memref<1x128xf32, #tpu.memory_space<any>>
    %c0_i32_13 = arith.constant 0 : i32
    %c0_i32_14 = arith.constant 0 : i32
    %19 = tpu.memref_slice %arg9[%c0_i32_13, %c0_i32_14] : memref<8x128xf32, #tpu.memory_space<vmem>> -> memref<1x128xf32, #tpu.memory_space<vmem>>
    %20 = tpu.memref_slice %arg10[%c2_i32, %c0_i32_11] : memref<3x8x!tpu.dma_semaphore, #tpu.memory_space<semaphore_mem>> -> memref<1x1x!tpu.dma_semaphore, #tpu.memory_space<semaphore_mem>>
    %21 = tpu.memref_squeeze %20 : memref<1x1x!tpu.dma_semaphore, #tpu.memory_space<semaphore_mem>> -> memref<!tpu.dma_semaphore, #tpu.memory_space<semaphore_mem>>
    tpu.enqueue_dma source(%18 : memref<1x128xf32, #tpu.memory_space<any>>) target(%19 : memref<1x128xf32, #tpu.memory_space<vmem>>) target_semaphore(%21 : memref<!tpu.dma_semaphore, #tpu.memory_space<semaphore_mem>>)
    %c1_i32_15 = arith.constant 1 : i32
    %22 = arith.addi %0, %c1_i32_15 : i32
    %23 = arith.index_cast %22 : i32 to index
    %24 = memref.load %arg1[%23] : memref<16xi32, #tpu.memory_space<smem>>
    %c1_i32_16 = arith.constant 1 : i32
    %25 = arith.addi %0, %c1_i32_16 : i32
    %26 = arith.index_cast %25 : i32 to index
    %27 = memref.load %arg2[%26] : memref<16xi32, #tpu.memory_space<smem>>
    %c1_i32_17 = arith.constant 1 : i32
    %28 = arith.addi %0, %c1_i32_17 : i32
    %29 = arith.index_cast %28 : i32 to index
    %30 = memref.load %arg3[%29] : memref<16xi32, #tpu.memory_space<smem>>
    %c0_i32_18 = arith.constant 0 : i32
    %c1_i32_19 = arith.constant 1 : i32
    %c0_i32_20 = arith.constant 0 : i32
    %31 = tpu.memref_slice %arg4[%24, %c0_i32_20] : memref<64x128xf32, #tpu.memory_space<any>> -> memref<1x128xf32, #tpu.memory_space<any>>
    %c1_i32_21 = arith.constant 1 : i32
    %c0_i32_22 = arith.constant 0 : i32
    %32 = tpu.memref_slice %arg7[%c1_i32_21, %c0_i32_22] : memref<8x128xf32, #tpu.memory_space<vmem>> -> memref<1x128xf32, #tpu.memory_space<vmem>>
    %33 = tpu.memref_slice %arg10[%c0_i32_18, %c1_i32_19] : memref<3x8x!tpu.dma_semaphore, #tpu.memory_space<semaphore_mem>> -> memref<1x1x!tpu.dma_semaphore, #tpu.memory_space<semaphore_mem>>
    %34 = tpu.memref_squeeze %33 : memref<1x1x!tpu.dma_semaphore, #tpu.memory_space<semaphore_mem>> -> memref<!tpu.dma_semaphore, #tpu.memory_space<semaphore_mem>>
    tpu.enqueue_dma source(%31 : memref<1x128xf32, #tpu.memory_space<any>>) target(%32 : memref<1x128xf32, #tpu.memory_space<vmem>>) target_semaphore(%34 : memref<!tpu.dma_semaphore, #tpu.memory_space<semaphore_mem>>)
    %c1_i32_23 = arith.constant 1 : i32
    %c1_i32_24 = arith.constant 1 : i32
    %c0_i32_25 = arith.constant 0 : i32
    %35 = tpu.memref_slice %arg5[%27, %c0_i32_25] : memref<16x128xf32, #tpu.memory_space<any>> -> memref<1x128xf32, #tpu.memory_space<any>>
    %c1_i32_26 = arith.constant 1 : i32
    %c0_i32_27 = arith.constant 0 : i32
    %36 = tpu.memref_slice %arg8[%c1_i32_26, %c0_i32_27] : memref<8x128xf32, #tpu.memory_space<vmem>> -> memref<1x128xf32, #tpu.memory_space<vmem>>
    %37 = tpu.memref_slice %arg10[%c1_i32_23, %c1_i32_24] : memref<3x8x!tpu.dma_semaphore, #tpu.memory_space<semaphore_mem>> -> memref<1x1x!tpu.dma_semaphore, #tpu.memory_space<semaphore_mem>>
    %38 = tpu.memref_squeeze %37 : memref<1x1x!tpu.dma_semaphore, #tpu.memory_space<semaphore_mem>> -> memref<!tpu.dma_semaphore, #tpu.memory_space<semaphore_mem>>
    tpu.enqueue_dma source(%35 : memref<1x128xf32, #tpu.memory_space<any>>) target(%36 : memref<1x128xf32, #tpu.memory_space<vmem>>) target_semaphore(%38 : memref<!tpu.dma_semaphore, #tpu.memory_space<semaphore_mem>>)
    %c2_i32_28 = arith.constant 2 : i32
    %c1_i32_29 = arith.constant 1 : i32
    %c0_i32_30 = arith.constant 0 : i32
    %39 = tpu.memref_slice %arg4[%30, %c0_i32_30] : memref<64x128xf32, #tpu.memory_space<any>> -> memref<1x128xf32, #tpu.memory_space<any>>
    %c1_i32_31 = arith.constant 1 : i32
    %c0_i32_32 = arith.constant 0 : i32
    %40 = tpu.memref_slice %arg9[%c1_i32_31, %c0_i32_32] : memref<8x128xf32, #tpu.memory_space<vmem>> -> memref<1x128xf32, #tpu.memory_space<vmem>>
    %41 = tpu.memref_slice %arg10[%c2_i32_28, %c1_i32_29] : memref<3x8x!tpu.dma_semaphore, #tpu.memory_space<semaphore_mem>> -> memref<1x1x!tpu.dma_semaphore, #tpu.memory_space<semaphore_mem>>
    %42 = tpu.memref_squeeze %41 : memref<1x1x!tpu.dma_semaphore, #tpu.memory_space<semaphore_mem>> -> memref<!tpu.dma_semaphore, #tpu.memory_space<semaphore_mem>>
    tpu.enqueue_dma source(%39 : memref<1x128xf32, #tpu.memory_space<any>>) target(%40 : memref<1x128xf32, #tpu.memory_space<vmem>>) target_semaphore(%42 : memref<!tpu.dma_semaphore, #tpu.memory_space<semaphore_mem>>)
    %c2_i32_33 = arith.constant 2 : i32
    %43 = arith.addi %0, %c2_i32_33 : i32
    %44 = arith.index_cast %43 : i32 to index
    %45 = memref.load %arg1[%44] : memref<16xi32, #tpu.memory_space<smem>>
    %c2_i32_34 = arith.constant 2 : i32
    %46 = arith.addi %0, %c2_i32_34 : i32
    %47 = arith.index_cast %46 : i32 to index
    %48 = memref.load %arg2[%47] : memref<16xi32, #tpu.memory_space<smem>>
    %c2_i32_35 = arith.constant 2 : i32
    %49 = arith.addi %0, %c2_i32_35 : i32
    %50 = arith.index_cast %49 : i32 to index
    %51 = memref.load %arg3[%50] : memref<16xi32, #tpu.memory_space<smem>>
    %c0_i32_36 = arith.constant 0 : i32
    %c2_i32_37 = arith.constant 2 : i32
    %c0_i32_38 = arith.constant 0 : i32
    %52 = tpu.memref_slice %arg4[%45, %c0_i32_38] : memref<64x128xf32, #tpu.memory_space<any>> -> memref<1x128xf32, #tpu.memory_space<any>>
    %c2_i32_39 = arith.constant 2 : i32
    %c0_i32_40 = arith.constant 0 : i32
    %53 = tpu.memref_slice %arg7[%c2_i32_39, %c0_i32_40] : memref<8x128xf32, #tpu.memory_space<vmem>> -> memref<1x128xf32, #tpu.memory_space<vmem>>
    %54 = tpu.memref_slice %arg10[%c0_i32_36, %c2_i32_37] : memref<3x8x!tpu.dma_semaphore, #tpu.memory_space<semaphore_mem>> -> memref<1x1x!tpu.dma_semaphore, #tpu.memory_space<semaphore_mem>>
    %55 = tpu.memref_squeeze %54 : memref<1x1x!tpu.dma_semaphore, #tpu.memory_space<semaphore_mem>> -> memref<!tpu.dma_semaphore, #tpu.memory_space<semaphore_mem>>
    tpu.enqueue_dma source(%52 : memref<1x128xf32, #tpu.memory_space<any>>) target(%53 : memref<1x128xf32, #tpu.memory_space<vmem>>) target_semaphore(%55 : memref<!tpu.dma_semaphore, #tpu.memory_space<semaphore_mem>>)
    %c1_i32_41 = arith.constant 1 : i32
    %c2_i32_42 = arith.constant 2 : i32
    %c0_i32_43 = arith.constant 0 : i32
    %56 = tpu.memref_slice %arg5[%48, %c0_i32_43] : memref<16x128xf32, #tpu.memory_space<any>> -> memref<1x128xf32, #tpu.memory_space<any>>
    %c2_i32_44 = arith.constant 2 : i32
    %c0_i32_45 = arith.constant 0 : i32
    %57 = tpu.memref_slice %arg8[%c2_i32_44, %c0_i32_45] : memref<8x128xf32, #tpu.memory_space<vmem>> -> memref<1x128xf32, #tpu.memory_space<vmem>>
    %58 = tpu.memref_slice %arg10[%c1_i32_41, %c2_i32_42] : memref<3x8x!tpu.dma_semaphore, #tpu.memory_space<semaphore_mem>> -> memref<1x1x!tpu.dma_semaphore, #tpu.memory_space<semaphore_mem>>
    %59 = tpu.memref_squeeze %58 : memref<1x1x!tpu.dma_semaphore, #tpu.memory_space<semaphore_mem>> -> memref<!tpu.dma_semaphore, #tpu.memory_space<semaphore_mem>>
    tpu.enqueue_dma source(%56 : memref<1x128xf32, #tpu.memory_space<any>>) target(%57 : memref<1x128xf32, #tpu.memory_space<vmem>>) target_semaphore(%59 : memref<!tpu.dma_semaphore, #tpu.memory_space<semaphore_mem>>)
    %c2_i32_46 = arith.constant 2 : i32
    %c2_i32_47 = arith.constant 2 : i32
    %c0_i32_48 = arith.constant 0 : i32
    %60 = tpu.memref_slice %arg4[%51, %c0_i32_48] : memref<64x128xf32, #tpu.memory_space<any>> -> memref<1x128xf32, #tpu.memory_space<any>>
    %c2_i32_49 = arith.constant 2 : i32
    %c0_i32_50 = arith.constant 0 : i32
    %61 = tpu.memref_slice %arg9[%c2_i32_49, %c0_i32_50] : memref<8x128xf32, #tpu.memory_space<vmem>> -> memref<1x128xf32, #tpu.memory_space<vmem>>
    %62 = tpu.memref_slice %arg10[%c2_i32_46, %c2_i32_47] : memref<3x8x!tpu.dma_semaphore, #tpu.memory_space<semaphore_mem>> -> memref<1x1x!tpu.dma_semaphore, #tpu.memory_space<semaphore_mem>>
    %63 = tpu.memref_squeeze %62 : memref<1x1x!tpu.dma_semaphore, #tpu.memory_space<semaphore_mem>> -> memref<!tpu.dma_semaphore, #tpu.memory_space<semaphore_mem>>
    tpu.enqueue_dma source(%60 : memref<1x128xf32, #tpu.memory_space<any>>) target(%61 : memref<1x128xf32, #tpu.memory_space<vmem>>) target_semaphore(%63 : memref<!tpu.dma_semaphore, #tpu.memory_space<semaphore_mem>>)
    %c3_i32 = arith.constant 3 : i32
    %64 = arith.addi %0, %c3_i32 : i32
    %65 = arith.index_cast %64 : i32 to index
    %66 = memref.load %arg1[%65] : memref<16xi32, #tpu.memory_space<smem>>
    %c3_i32_51 = arith.constant 3 : i32
    %67 = arith.addi %0, %c3_i32_51 : i32
    %68 = arith.index_cast %67 : i32 to index
    %69 = memref.load %arg2[%68] : memref<16xi32, #tpu.memory_space<smem>>
    %c3_i32_52 = arith.constant 3 : i32
    %70 = arith.addi %0, %c3_i32_52 : i32
    %71 = arith.index_cast %70 : i32 to index
    %72 = memref.load %arg3[%71] : memref<16xi32, #tpu.memory_space<smem>>
    %c0_i32_53 = arith.constant 0 : i32
    %c3_i32_54 = arith.constant 3 : i32
    %c0_i32_55 = arith.constant 0 : i32
    %73 = tpu.memref_slice %arg4[%66, %c0_i32_55] : memref<64x128xf32, #tpu.memory_space<any>> -> memref<1x128xf32, #tpu.memory_space<any>>
    %c3_i32_56 = arith.constant 3 : i32
    %c0_i32_57 = arith.constant 0 : i32
    %74 = tpu.memref_slice %arg7[%c3_i32_56, %c0_i32_57] : memref<8x128xf32, #tpu.memory_space<vmem>> -> memref<1x128xf32, #tpu.memory_space<vmem>>
    %75 = tpu.memref_slice %arg10[%c0_i32_53, %c3_i32_54] : memref<3x8x!tpu.dma_semaphore, #tpu.memory_space<semaphore_mem>> -> memref<1x1x!tpu.dma_semaphore, #tpu.memory_space<semaphore_mem>>
    %76 = tpu.memref_squeeze %75 : memref<1x1x!tpu.dma_semaphore, #tpu.memory_space<semaphore_mem>> -> memref<!tpu.dma_semaphore, #tpu.memory_space<semaphore_mem>>
    tpu.enqueue_dma source(%73 : memref<1x128xf32, #tpu.memory_space<any>>) target(%74 : memref<1x128xf32, #tpu.memory_space<vmem>>) target_semaphore(%76 : memref<!tpu.dma_semaphore, #tpu.memory_space<semaphore_mem>>)
    %c1_i32_58 = arith.constant 1 : i32
    %c3_i32_59 = arith.constant 3 : i32
    %c0_i32_60 = arith.constant 0 : i32
    %77 = tpu.memref_slice %arg5[%69, %c0_i32_60] : memref<16x128xf32, #tpu.memory_space<any>> -> memref<1x128xf32, #tpu.memory_space<any>>
    %c3_i32_61 = arith.constant 3 : i32
    %c0_i32_62 = arith.constant 0 : i32
    %78 = tpu.memref_slice %arg8[%c3_i32_61, %c0_i32_62] : memref<8x128xf32, #tpu.memory_space<vmem>> -> memref<1x128xf32, #tpu.memory_space<vmem>>
    %79 = tpu.memref_slice %arg10[%c1_i32_58, %c3_i32_59] : memref<3x8x!tpu.dma_semaphore, #tpu.memory_space<semaphore_mem>> -> memref<1x1x!tpu.dma_semaphore, #tpu.memory_space<semaphore_mem>>
    %80 = tpu.memref_squeeze %79 : memref<1x1x!tpu.dma_semaphore, #tpu.memory_space<semaphore_mem>> -> memref<!tpu.dma_semaphore, #tpu.memory_space<semaphore_mem>>
    tpu.enqueue_dma source(%77 : memref<1x128xf32, #tpu.memory_space<any>>) target(%78 : memref<1x128xf32, #tpu.memory_space<vmem>>) target_semaphore(%80 : memref<!tpu.dma_semaphore, #tpu.memory_space<semaphore_mem>>)
    %c2_i32_63 = arith.constant 2 : i32
    %c3_i32_64 = arith.constant 3 : i32
    %c0_i32_65 = arith.constant 0 : i32
    %81 = tpu.memref_slice %arg4[%72, %c0_i32_65] : memref<64x128xf32, #tpu.memory_space<any>> -> memref<1x128xf32, #tpu.memory_space<any>>
    %c3_i32_66 = arith.constant 3 : i32
    %c0_i32_67 = arith.constant 0 : i32
    %82 = tpu.memref_slice %arg9[%c3_i32_66, %c0_i32_67] : memref<8x128xf32, #tpu.memory_space<vmem>> -> memref<1x128xf32, #tpu.memory_space<vmem>>
    %83 = tpu.memref_slice %arg10[%c2_i32_63, %c3_i32_64] : memref<3x8x!tpu.dma_semaphore, #tpu.memory_space<semaphore_mem>> -> memref<1x1x!tpu.dma_semaphore, #tpu.memory_space<semaphore_mem>>
    %84 = tpu.memref_squeeze %83 : memref<1x1x!tpu.dma_semaphore, #tpu.memory_space<semaphore_mem>> -> memref<!tpu.dma_semaphore, #tpu.memory_space<semaphore_mem>>
    tpu.enqueue_dma source(%81 : memref<1x128xf32, #tpu.memory_space<any>>) target(%82 : memref<1x128xf32, #tpu.memory_space<vmem>>) target_semaphore(%84 : memref<!tpu.dma_semaphore, #tpu.memory_space<semaphore_mem>>)
    %c4_i32 = arith.constant 4 : i32
    %85 = arith.addi %0, %c4_i32 : i32
    %86 = arith.index_cast %85 : i32 to index
    %87 = memref.load %arg1[%86] : memref<16xi32, #tpu.memory_space<smem>>
    %c4_i32_68 = arith.constant 4 : i32
    %88 = arith.addi %0, %c4_i32_68 : i32
    %89 = arith.index_cast %88 : i32 to index
    %90 = memref.load %arg2[%89] : memref<16xi32, #tpu.memory_space<smem>>
    %c4_i32_69 = arith.constant 4 : i32
    %91 = arith.addi %0, %c4_i32_69 : i32
    %92 = arith.index_cast %91 : i32 to index
    %93 = memref.load %arg3[%92] : memref<16xi32, #tpu.memory_space<smem>>
    %c0_i32_70 = arith.constant 0 : i32
    %c4_i32_71 = arith.constant 4 : i32
    %c0_i32_72 = arith.constant 0 : i32
    %94 = tpu.memref_slice %arg4[%87, %c0_i32_72] : memref<64x128xf32, #tpu.memory_space<any>> -> memref<1x128xf32, #tpu.memory_space<any>>
    %c4_i32_73 = arith.constant 4 : i32
    %c0_i32_74 = arith.constant 0 : i32
    %95 = tpu.memref_slice %arg7[%c4_i32_73, %c0_i32_74] : memref<8x128xf32, #tpu.memory_space<vmem>> -> memref<1x128xf32, #tpu.memory_space<vmem>>
    %96 = tpu.memref_slice %arg10[%c0_i32_70, %c4_i32_71] : memref<3x8x!tpu.dma_semaphore, #tpu.memory_space<semaphore_mem>> -> memref<1x1x!tpu.dma_semaphore, #tpu.memory_space<semaphore_mem>>
    %97 = tpu.memref_squeeze %96 : memref<1x1x!tpu.dma_semaphore, #tpu.memory_space<semaphore_mem>> -> memref<!tpu.dma_semaphore, #tpu.memory_space<semaphore_mem>>
    tpu.enqueue_dma source(%94 : memref<1x128xf32, #tpu.memory_space<any>>) target(%95 : memref<1x128xf32, #tpu.memory_space<vmem>>) target_semaphore(%97 : memref<!tpu.dma_semaphore, #tpu.memory_space<semaphore_mem>>)
    %c1_i32_75 = arith.constant 1 : i32
    %c4_i32_76 = arith.constant 4 : i32
    %c0_i32_77 = arith.constant 0 : i32
    %98 = tpu.memref_slice %arg5[%90, %c0_i32_77] : memref<16x128xf32, #tpu.memory_space<any>> -> memref<1x128xf32, #tpu.memory_space<any>>
    %c4_i32_78 = arith.constant 4 : i32
    %c0_i32_79 = arith.constant 0 : i32
    %99 = tpu.memref_slice %arg8[%c4_i32_78, %c0_i32_79] : memref<8x128xf32, #tpu.memory_space<vmem>> -> memref<1x128xf32, #tpu.memory_space<vmem>>
    %100 = tpu.memref_slice %arg10[%c1_i32_75, %c4_i32_76] : memref<3x8x!tpu.dma_semaphore, #tpu.memory_space<semaphore_mem>> -> memref<1x1x!tpu.dma_semaphore, #tpu.memory_space<semaphore_mem>>
    %101 = tpu.memref_squeeze %100 : memref<1x1x!tpu.dma_semaphore, #tpu.memory_space<semaphore_mem>> -> memref<!tpu.dma_semaphore, #tpu.memory_space<semaphore_mem>>
    tpu.enqueue_dma source(%98 : memref<1x128xf32, #tpu.memory_space<any>>) target(%99 : memref<1x128xf32, #tpu.memory_space<vmem>>) target_semaphore(%101 : memref<!tpu.dma_semaphore, #tpu.memory_space<semaphore_mem>>)
    %c2_i32_80 = arith.constant 2 : i32
    %c4_i32_81 = arith.constant 4 : i32
    %c0_i32_82 = arith.constant 0 : i32
    %102 = tpu.memref_slice %arg4[%93, %c0_i32_82] : memref<64x128xf32, #tpu.memory_space<any>> -> memref<1x128xf32, #tpu.memory_space<any>>
    %c4_i32_83 = arith.constant 4 : i32
    %c0_i32_84 = arith.constant 0 : i32
    %103 = tpu.memref_slice %arg9[%c4_i32_83, %c0_i32_84] : memref<8x128xf32, #tpu.memory_space<vmem>> -> memref<1x128xf32, #tpu.memory_space<vmem>>
    %104 = tpu.memref_slice %arg10[%c2_i32_80, %c4_i32_81] : memref<3x8x!tpu.dma_semaphore, #tpu.memory_space<semaphore_mem>> -> memref<1x1x!tpu.dma_semaphore, #tpu.memory_space<semaphore_mem>>
    %105 = tpu.memref_squeeze %104 : memref<1x1x!tpu.dma_semaphore, #tpu.memory_space<semaphore_mem>> -> memref<!tpu.dma_semaphore, #tpu.memory_space<semaphore_mem>>
    tpu.enqueue_dma source(%102 : memref<1x128xf32, #tpu.memory_space<any>>) target(%103 : memref<1x128xf32, #tpu.memory_space<vmem>>) target_semaphore(%105 : memref<!tpu.dma_semaphore, #tpu.memory_space<semaphore_mem>>)
    %c5_i32 = arith.constant 5 : i32
    %106 = arith.addi %0, %c5_i32 : i32
    %107 = arith.index_cast %106 : i32 to index
    %108 = memref.load %arg1[%107] : memref<16xi32, #tpu.memory_space<smem>>
    %c5_i32_85 = arith.constant 5 : i32
    %109 = arith.addi %0, %c5_i32_85 : i32
    %110 = arith.index_cast %109 : i32 to index
    %111 = memref.load %arg2[%110] : memref<16xi32, #tpu.memory_space<smem>>
    %c5_i32_86 = arith.constant 5 : i32
    %112 = arith.addi %0, %c5_i32_86 : i32
    %113 = arith.index_cast %112 : i32 to index
    %114 = memref.load %arg3[%113] : memref<16xi32, #tpu.memory_space<smem>>
    %c0_i32_87 = arith.constant 0 : i32
    %c5_i32_88 = arith.constant 5 : i32
    %c0_i32_89 = arith.constant 0 : i32
    %115 = tpu.memref_slice %arg4[%108, %c0_i32_89] : memref<64x128xf32, #tpu.memory_space<any>> -> memref<1x128xf32, #tpu.memory_space<any>>
    %c5_i32_90 = arith.constant 5 : i32
    %c0_i32_91 = arith.constant 0 : i32
    %116 = tpu.memref_slice %arg7[%c5_i32_90, %c0_i32_91] : memref<8x128xf32, #tpu.memory_space<vmem>> -> memref<1x128xf32, #tpu.memory_space<vmem>>
    %117 = tpu.memref_slice %arg10[%c0_i32_87, %c5_i32_88] : memref<3x8x!tpu.dma_semaphore, #tpu.memory_space<semaphore_mem>> -> memref<1x1x!tpu.dma_semaphore, #tpu.memory_space<semaphore_mem>>
    %118 = tpu.memref_squeeze %117 : memref<1x1x!tpu.dma_semaphore, #tpu.memory_space<semaphore_mem>> -> memref<!tpu.dma_semaphore, #tpu.memory_space<semaphore_mem>>
    tpu.enqueue_dma source(%115 : memref<1x128xf32, #tpu.memory_space<any>>) target(%116 : memref<1x128xf32, #tpu.memory_space<vmem>>) target_semaphore(%118 : memref<!tpu.dma_semaphore, #tpu.memory_space<semaphore_mem>>)
    %c1_i32_92 = arith.constant 1 : i32
    %c5_i32_93 = arith.constant 5 : i32
    %c0_i32_94 = arith.constant 0 : i32
    %119 = tpu.memref_slice %arg5[%111, %c0_i32_94] : memref<16x128xf32, #tpu.memory_space<any>> -> memref<1x128xf32, #tpu.memory_space<any>>
    %c5_i32_95 = arith.constant 5 : i32
    %c0_i32_96 = arith.constant 0 : i32
    %120 = tpu.memref_slice %arg8[%c5_i32_95, %c0_i32_96] : memref<8x128xf32, #tpu.memory_space<vmem>> -> memref<1x128xf32, #tpu.memory_space<vmem>>
    %121 = tpu.memref_slice %arg10[%c1_i32_92, %c5_i32_93] : memref<3x8x!tpu.dma_semaphore, #tpu.memory_space<semaphore_mem>> -> memref<1x1x!tpu.dma_semaphore, #tpu.memory_space<semaphore_mem>>
    %122 = tpu.memref_squeeze %121 : memref<1x1x!tpu.dma_semaphore, #tpu.memory_space<semaphore_mem>> -> memref<!tpu.dma_semaphore, #tpu.memory_space<semaphore_mem>>
    tpu.enqueue_dma source(%119 : memref<1x128xf32, #tpu.memory_space<any>>) target(%120 : memref<1x128xf32, #tpu.memory_space<vmem>>) target_semaphore(%122 : memref<!tpu.dma_semaphore, #tpu.memory_space<semaphore_mem>>)
    %c2_i32_97 = arith.constant 2 : i32
    %c5_i32_98 = arith.constant 5 : i32
    %c0_i32_99 = arith.constant 0 : i32
    %123 = tpu.memref_slice %arg4[%114, %c0_i32_99] : memref<64x128xf32, #tpu.memory_space<any>> -> memref<1x128xf32, #tpu.memory_space<any>>
    %c5_i32_100 = arith.constant 5 : i32
    %c0_i32_101 = arith.constant 0 : i32
    %124 = tpu.memref_slice %arg9[%c5_i32_100, %c0_i32_101] : memref<8x128xf32, #tpu.memory_space<vmem>> -> memref<1x128xf32, #tpu.memory_space<vmem>>
    %125 = tpu.memref_slice %arg10[%c2_i32_97, %c5_i32_98] : memref<3x8x!tpu.dma_semaphore, #tpu.memory_space<semaphore_mem>> -> memref<1x1x!tpu.dma_semaphore, #tpu.memory_space<semaphore_mem>>
    %126 = tpu.memref_squeeze %125 : memref<1x1x!tpu.dma_semaphore, #tpu.memory_space<semaphore_mem>> -> memref<!tpu.dma_semaphore, #tpu.memory_space<semaphore_mem>>
    tpu.enqueue_dma source(%123 : memref<1x128xf32, #tpu.memory_space<any>>) target(%124 : memref<1x128xf32, #tpu.memory_space<vmem>>) target_semaphore(%126 : memref<!tpu.dma_semaphore, #tpu.memory_space<semaphore_mem>>)
    %c6_i32 = arith.constant 6 : i32
    %127 = arith.addi %0, %c6_i32 : i32
    %128 = arith.index_cast %127 : i32 to index
    %129 = memref.load %arg1[%128] : memref<16xi32, #tpu.memory_space<smem>>
    %c6_i32_102 = arith.constant 6 : i32
    %130 = arith.addi %0, %c6_i32_102 : i32
    %131 = arith.index_cast %130 : i32 to index
    %132 = memref.load %arg2[%131] : memref<16xi32, #tpu.memory_space<smem>>
    %c6_i32_103 = arith.constant 6 : i32
    %133 = arith.addi %0, %c6_i32_103 : i32
    %134 = arith.index_cast %133 : i32 to index
    %135 = memref.load %arg3[%134] : memref<16xi32, #tpu.memory_space<smem>>
    %c0_i32_104 = arith.constant 0 : i32
    %c6_i32_105 = arith.constant 6 : i32
    %c0_i32_106 = arith.constant 0 : i32
    %136 = tpu.memref_slice %arg4[%129, %c0_i32_106] : memref<64x128xf32, #tpu.memory_space<any>> -> memref<1x128xf32, #tpu.memory_space<any>>
    %c6_i32_107 = arith.constant 6 : i32
    %c0_i32_108 = arith.constant 0 : i32
    %137 = tpu.memref_slice %arg7[%c6_i32_107, %c0_i32_108] : memref<8x128xf32, #tpu.memory_space<vmem>> -> memref<1x128xf32, #tpu.memory_space<vmem>>
    %138 = tpu.memref_slice %arg10[%c0_i32_104, %c6_i32_105] : memref<3x8x!tpu.dma_semaphore, #tpu.memory_space<semaphore_mem>> -> memref<1x1x!tpu.dma_semaphore, #tpu.memory_space<semaphore_mem>>
    %139 = tpu.memref_squeeze %138 : memref<1x1x!tpu.dma_semaphore, #tpu.memory_space<semaphore_mem>> -> memref<!tpu.dma_semaphore, #tpu.memory_space<semaphore_mem>>
    tpu.enqueue_dma source(%136 : memref<1x128xf32, #tpu.memory_space<any>>) target(%137 : memref<1x128xf32, #tpu.memory_space<vmem>>) target_semaphore(%139 : memref<!tpu.dma_semaphore, #tpu.memory_space<semaphore_mem>>)
    %c1_i32_109 = arith.constant 1 : i32
    %c6_i32_110 = arith.constant 6 : i32
    %c0_i32_111 = arith.constant 0 : i32
    %140 = tpu.memref_slice %arg5[%132, %c0_i32_111] : memref<16x128xf32, #tpu.memory_space<any>> -> memref<1x128xf32, #tpu.memory_space<any>>
    %c6_i32_112 = arith.constant 6 : i32
    %c0_i32_113 = arith.constant 0 : i32
    %141 = tpu.memref_slice %arg8[%c6_i32_112, %c0_i32_113] : memref<8x128xf32, #tpu.memory_space<vmem>> -> memref<1x128xf32, #tpu.memory_space<vmem>>
    %142 = tpu.memref_slice %arg10[%c1_i32_109, %c6_i32_110] : memref<3x8x!tpu.dma_semaphore, #tpu.memory_space<semaphore_mem>> -> memref<1x1x!tpu.dma_semaphore, #tpu.memory_space<semaphore_mem>>
    %143 = tpu.memref_squeeze %142 : memref<1x1x!tpu.dma_semaphore, #tpu.memory_space<semaphore_mem>> -> memref<!tpu.dma_semaphore, #tpu.memory_space<semaphore_mem>>
    tpu.enqueue_dma source(%140 : memref<1x128xf32, #tpu.memory_space<any>>) target(%141 : memref<1x128xf32, #tpu.memory_space<vmem>>) target_semaphore(%143 : memref<!tpu.dma_semaphore, #tpu.memory_space<semaphore_mem>>)
    %c2_i32_114 = arith.constant 2 : i32
    %c6_i32_115 = arith.constant 6 : i32
    %c0_i32_116 = arith.constant 0 : i32
    %144 = tpu.memref_slice %arg4[%135, %c0_i32_116] : memref<64x128xf32, #tpu.memory_space<any>> -> memref<1x128xf32, #tpu.memory_space<any>>
    %c6_i32_117 = arith.constant 6 : i32
    %c0_i32_118 = arith.constant 0 : i32
    %145 = tpu.memref_slice %arg9[%c6_i32_117, %c0_i32_118] : memref<8x128xf32, #tpu.memory_space<vmem>> -> memref<1x128xf32, #tpu.memory_space<vmem>>
    %146 = tpu.memref_slice %arg10[%c2_i32_114, %c6_i32_115] : memref<3x8x!tpu.dma_semaphore, #tpu.memory_space<semaphore_mem>> -> memref<1x1x!tpu.dma_semaphore, #tpu.memory_space<semaphore_mem>>
    %147 = tpu.memref_squeeze %146 : memref<1x1x!tpu.dma_semaphore, #tpu.memory_space<semaphore_mem>> -> memref<!tpu.dma_semaphore, #tpu.memory_space<semaphore_mem>>
    tpu.enqueue_dma source(%144 : memref<1x128xf32, #tpu.memory_space<any>>) target(%145 : memref<1x128xf32, #tpu.memory_space<vmem>>) target_semaphore(%147 : memref<!tpu.dma_semaphore, #tpu.memory_space<semaphore_mem>>)
    %c7_i32 = arith.constant 7 : i32
    %148 = arith.addi %0, %c7_i32 : i32
    %149 = arith.index_cast %148 : i32 to index
    %150 = memref.load %arg1[%149] : memref<16xi32, #tpu.memory_space<smem>>
    %c7_i32_119 = arith.constant 7 : i32
    %151 = arith.addi %0, %c7_i32_119 : i32
    %152 = arith.index_cast %151 : i32 to index
    %153 = memref.load %arg2[%152] : memref<16xi32, #tpu.memory_space<smem>>
    %c7_i32_120 = arith.constant 7 : i32
    %154 = arith.addi %0, %c7_i32_120 : i32
    %155 = arith.index_cast %154 : i32 to index
    %156 = memref.load %arg3[%155] : memref<16xi32, #tpu.memory_space<smem>>
    %c0_i32_121 = arith.constant 0 : i32
    %c7_i32_122 = arith.constant 7 : i32
    %c0_i32_123 = arith.constant 0 : i32
    %157 = tpu.memref_slice %arg4[%150, %c0_i32_123] : memref<64x128xf32, #tpu.memory_space<any>> -> memref<1x128xf32, #tpu.memory_space<any>>
    %c7_i32_124 = arith.constant 7 : i32
    %c0_i32_125 = arith.constant 0 : i32
    %158 = tpu.memref_slice %arg7[%c7_i32_124, %c0_i32_125] : memref<8x128xf32, #tpu.memory_space<vmem>> -> memref<1x128xf32, #tpu.memory_space<vmem>>
    %159 = tpu.memref_slice %arg10[%c0_i32_121, %c7_i32_122] : memref<3x8x!tpu.dma_semaphore, #tpu.memory_space<semaphore_mem>> -> memref<1x1x!tpu.dma_semaphore, #tpu.memory_space<semaphore_mem>>
    %160 = tpu.memref_squeeze %159 : memref<1x1x!tpu.dma_semaphore, #tpu.memory_space<semaphore_mem>> -> memref<!tpu.dma_semaphore, #tpu.memory_space<semaphore_mem>>
    tpu.enqueue_dma source(%157 : memref<1x128xf32, #tpu.memory_space<any>>) target(%158 : memref<1x128xf32, #tpu.memory_space<vmem>>) target_semaphore(%160 : memref<!tpu.dma_semaphore, #tpu.memory_space<semaphore_mem>>)
    %c1_i32_126 = arith.constant 1 : i32
    %c7_i32_127 = arith.constant 7 : i32
    %c0_i32_128 = arith.constant 0 : i32
    %161 = tpu.memref_slice %arg5[%153, %c0_i32_128] : memref<16x128xf32, #tpu.memory_space<any>> -> memref<1x128xf32, #tpu.memory_space<any>>
    %c7_i32_129 = arith.constant 7 : i32
    %c0_i32_130 = arith.constant 0 : i32
    %162 = tpu.memref_slice %arg8[%c7_i32_129, %c0_i32_130] : memref<8x128xf32, #tpu.memory_space<vmem>> -> memref<1x128xf32, #tpu.memory_space<vmem>>
    %163 = tpu.memref_slice %arg10[%c1_i32_126, %c7_i32_127] : memref<3x8x!tpu.dma_semaphore, #tpu.memory_space<semaphore_mem>> -> memref<1x1x!tpu.dma_semaphore, #tpu.memory_space<semaphore_mem>>
    %164 = tpu.memref_squeeze %163 : memref<1x1x!tpu.dma_semaphore, #tpu.memory_space<semaphore_mem>> -> memref<!tpu.dma_semaphore, #tpu.memory_space<semaphore_mem>>
    tpu.enqueue_dma source(%161 : memref<1x128xf32, #tpu.memory_space<any>>) target(%162 : memref<1x128xf32, #tpu.memory_space<vmem>>) target_semaphore(%164 : memref<!tpu.dma_semaphore, #tpu.memory_space<semaphore_mem>>)
    %c2_i32_131 = arith.constant 2 : i32
    %c7_i32_132 = arith.constant 7 : i32
    %c0_i32_133 = arith.constant 0 : i32
    %165 = tpu.memref_slice %arg4[%156, %c0_i32_133] : memref<64x128xf32, #tpu.memory_space<any>> -> memref<1x128xf32, #tpu.memory_space<any>>
    %c7_i32_134 = arith.constant 7 : i32
    %c0_i32_135 = arith.constant 0 : i32
    %166 = tpu.memref_slice %arg9[%c7_i32_134, %c0_i32_135] : memref<8x128xf32, #tpu.memory_space<vmem>> -> memref<1x128xf32, #tpu.memory_space<vmem>>
    %167 = tpu.memref_slice %arg10[%c2_i32_131, %c7_i32_132] : memref<3x8x!tpu.dma_semaphore, #tpu.memory_space<semaphore_mem>> -> memref<1x1x!tpu.dma_semaphore, #tpu.memory_space<semaphore_mem>>
    %168 = tpu.memref_squeeze %167 : memref<1x1x!tpu.dma_semaphore, #tpu.memory_space<semaphore_mem>> -> memref<!tpu.dma_semaphore, #tpu.memory_space<semaphore_mem>>
    tpu.enqueue_dma source(%165 : memref<1x128xf32, #tpu.memory_space<any>>) target(%166 : memref<1x128xf32, #tpu.memory_space<vmem>>) target_semaphore(%168 : memref<!tpu.dma_semaphore, #tpu.memory_space<semaphore_mem>>)
    %c0_i32_136 = arith.constant 0 : i32
    %c0_i32_137 = arith.constant 0 : i32
    %c0_i32_138 = arith.constant 0 : i32
    %169 = tpu.memref_slice %arg4[%3, %c0_i32_138] : memref<64x128xf32, #tpu.memory_space<any>> -> memref<1x128xf32, #tpu.memory_space<any>>
    %c0_i32_139 = arith.constant 0 : i32
    %c0_i32_140 = arith.constant 0 : i32
    %170 = tpu.memref_slice %arg7[%c0_i32_139, %c0_i32_140] : memref<8x128xf32, #tpu.memory_space<vmem>> -> memref<1x128xf32, #tpu.memory_space<vmem>>
    %171 = tpu.memref_slice %arg10[%c0_i32_136, %c0_i32_137] : memref<3x8x!tpu.dma_semaphore, #tpu.memory_space<semaphore_mem>> -> memref<1x1x!tpu.dma_semaphore, #tpu.memory_space<semaphore_mem>>
    %172 = tpu.memref_squeeze %171 : memref<1x1x!tpu.dma_semaphore, #tpu.memory_space<semaphore_mem>> -> memref<!tpu.dma_semaphore, #tpu.memory_space<semaphore_mem>>
    tpu.wait_dma2 semaphore(%172 : memref<!tpu.dma_semaphore, #tpu.memory_space<semaphore_mem>>) src(%169 : memref<1x128xf32, #tpu.memory_space<any>>) dst(%170 : memref<1x128xf32, #tpu.memory_space<vmem>>)
    %c1_i32_141 = arith.constant 1 : i32
    %c0_i32_142 = arith.constant 0 : i32
    %c0_i32_143 = arith.constant 0 : i32
    %173 = tpu.memref_slice %arg5[%6, %c0_i32_143] : memref<16x128xf32, #tpu.memory_space<any>> -> memref<1x128xf32, #tpu.memory_space<any>>
    %c0_i32_144 = arith.constant 0 : i32
    %c0_i32_145 = arith.constant 0 : i32
    %174 = tpu.memref_slice %arg8[%c0_i32_144, %c0_i32_145] : memref<8x128xf32, #tpu.memory_space<vmem>> -> memref<1x128xf32, #tpu.memory_space<vmem>>
    %175 = tpu.memref_slice %arg10[%c1_i32_141, %c0_i32_142] : memref<3x8x!tpu.dma_semaphore, #tpu.memory_space<semaphore_mem>> -> memref<1x1x!tpu.dma_semaphore, #tpu.memory_space<semaphore_mem>>
    %176 = tpu.memref_squeeze %175 : memref<1x1x!tpu.dma_semaphore, #tpu.memory_space<semaphore_mem>> -> memref<!tpu.dma_semaphore, #tpu.memory_space<semaphore_mem>>
    tpu.wait_dma2 semaphore(%176 : memref<!tpu.dma_semaphore, #tpu.memory_space<semaphore_mem>>) src(%173 : memref<1x128xf32, #tpu.memory_space<any>>) dst(%174 : memref<1x128xf32, #tpu.memory_space<vmem>>)
    %c2_i32_146 = arith.constant 2 : i32
    %c0_i32_147 = arith.constant 0 : i32
    %c0_i32_148 = arith.constant 0 : i32
    %177 = tpu.memref_slice %arg4[%9, %c0_i32_148] : memref<64x128xf32, #tpu.memory_space<any>> -> memref<1x128xf32, #tpu.memory_space<any>>
    %c0_i32_149 = arith.constant 0 : i32
    %c0_i32_150 = arith.constant 0 : i32
    %178 = tpu.memref_slice %arg9[%c0_i32_149, %c0_i32_150] : memref<8x128xf32, #tpu.memory_space<vmem>> -> memref<1x128xf32, #tpu.memory_space<vmem>>
    %179 = tpu.memref_slice %arg10[%c2_i32_146, %c0_i32_147] : memref<3x8x!tpu.dma_semaphore, #tpu.memory_space<semaphore_mem>> -> memref<1x1x!tpu.dma_semaphore, #tpu.memory_space<semaphore_mem>>
    %180 = tpu.memref_squeeze %179 : memref<1x1x!tpu.dma_semaphore, #tpu.memory_space<semaphore_mem>> -> memref<!tpu.dma_semaphore, #tpu.memory_space<semaphore_mem>>
    tpu.wait_dma2 semaphore(%180 : memref<!tpu.dma_semaphore, #tpu.memory_space<semaphore_mem>>) src(%177 : memref<1x128xf32, #tpu.memory_space<any>>) dst(%178 : memref<1x128xf32, #tpu.memory_space<vmem>>)
    %c0_i32_151 = arith.constant 0 : i32
    %c1_i32_152 = arith.constant 1 : i32
    %c0_i32_153 = arith.constant 0 : i32
    %181 = tpu.memref_slice %arg4[%24, %c0_i32_153] : memref<64x128xf32, #tpu.memory_space<any>> -> memref<1x128xf32, #tpu.memory_space<any>>
    %c1_i32_154 = arith.constant 1 : i32
    %c0_i32_155 = arith.constant 0 : i32
    %182 = tpu.memref_slice %arg7[%c1_i32_154, %c0_i32_155] : memref<8x128xf32, #tpu.memory_space<vmem>> -> memref<1x128xf32, #tpu.memory_space<vmem>>
    %183 = tpu.memref_slice %arg10[%c0_i32_151, %c1_i32_152] : memref<3x8x!tpu.dma_semaphore, #tpu.memory_space<semaphore_mem>> -> memref<1x1x!tpu.dma_semaphore, #tpu.memory_space<semaphore_mem>>
    %184 = tpu.memref_squeeze %183 : memref<1x1x!tpu.dma_semaphore, #tpu.memory_space<semaphore_mem>> -> memref<!tpu.dma_semaphore, #tpu.memory_space<semaphore_mem>>
    tpu.wait_dma2 semaphore(%184 : memref<!tpu.dma_semaphore, #tpu.memory_space<semaphore_mem>>) src(%181 : memref<1x128xf32, #tpu.memory_space<any>>) dst(%182 : memref<1x128xf32, #tpu.memory_space<vmem>>)
    %c1_i32_156 = arith.constant 1 : i32
    %c1_i32_157 = arith.constant 1 : i32
    %c0_i32_158 = arith.constant 0 : i32
    %185 = tpu.memref_slice %arg5[%27, %c0_i32_158] : memref<16x128xf32, #tpu.memory_space<any>> -> memref<1x128xf32, #tpu.memory_space<any>>
    %c1_i32_159 = arith.constant 1 : i32
    %c0_i32_160 = arith.constant 0 : i32
    %186 = tpu.memref_slice %arg8[%c1_i32_159, %c0_i32_160] : memref<8x128xf32, #tpu.memory_space<vmem>> -> memref<1x128xf32, #tpu.memory_space<vmem>>
    %187 = tpu.memref_slice %arg10[%c1_i32_156, %c1_i32_157] : memref<3x8x!tpu.dma_semaphore, #tpu.memory_space<semaphore_mem>> -> memref<1x1x!tpu.dma_semaphore, #tpu.memory_space<semaphore_mem>>
    %188 = tpu.memref_squeeze %187 : memref<1x1x!tpu.dma_semaphore, #tpu.memory_space<semaphore_mem>> -> memref<!tpu.dma_semaphore, #tpu.memory_space<semaphore_mem>>
    tpu.wait_dma2 semaphore(%188 : memref<!tpu.dma_semaphore, #tpu.memory_space<semaphore_mem>>) src(%185 : memref<1x128xf32, #tpu.memory_space<any>>) dst(%186 : memref<1x128xf32, #tpu.memory_space<vmem>>)
    %c2_i32_161 = arith.constant 2 : i32
    %c1_i32_162 = arith.constant 1 : i32
    %c0_i32_163 = arith.constant 0 : i32
    %189 = tpu.memref_slice %arg4[%30, %c0_i32_163] : memref<64x128xf32, #tpu.memory_space<any>> -> memref<1x128xf32, #tpu.memory_space<any>>
    %c1_i32_164 = arith.constant 1 : i32
    %c0_i32_165 = arith.constant 0 : i32
    %190 = tpu.memref_slice %arg9[%c1_i32_164, %c0_i32_165] : memref<8x128xf32, #tpu.memory_space<vmem>> -> memref<1x128xf32, #tpu.memory_space<vmem>>
    %191 = tpu.memref_slice %arg10[%c2_i32_161, %c1_i32_162] : memref<3x8x!tpu.dma_semaphore, #tpu.memory_space<semaphore_mem>> -> memref<1x1x!tpu.dma_semaphore, #tpu.memory_space<semaphore_mem>>
    %192 = tpu.memref_squeeze %191 : memref<1x1x!tpu.dma_semaphore, #tpu.memory_space<semaphore_mem>> -> memref<!tpu.dma_semaphore, #tpu.memory_space<semaphore_mem>>
    tpu.wait_dma2 semaphore(%192 : memref<!tpu.dma_semaphore, #tpu.memory_space<semaphore_mem>>) src(%189 : memref<1x128xf32, #tpu.memory_space<any>>) dst(%190 : memref<1x128xf32, #tpu.memory_space<vmem>>)
    %c0_i32_166 = arith.constant 0 : i32
    %c2_i32_167 = arith.constant 2 : i32
    %c0_i32_168 = arith.constant 0 : i32
    %193 = tpu.memref_slice %arg4[%45, %c0_i32_168] : memref<64x128xf32, #tpu.memory_space<any>> -> memref<1x128xf32, #tpu.memory_space<any>>
    %c2_i32_169 = arith.constant 2 : i32
    %c0_i32_170 = arith.constant 0 : i32
    %194 = tpu.memref_slice %arg7[%c2_i32_169, %c0_i32_170] : memref<8x128xf32, #tpu.memory_space<vmem>> -> memref<1x128xf32, #tpu.memory_space<vmem>>
    %195 = tpu.memref_slice %arg10[%c0_i32_166, %c2_i32_167] : memref<3x8x!tpu.dma_semaphore, #tpu.memory_space<semaphore_mem>> -> memref<1x1x!tpu.dma_semaphore, #tpu.memory_space<semaphore_mem>>
    %196 = tpu.memref_squeeze %195 : memref<1x1x!tpu.dma_semaphore, #tpu.memory_space<semaphore_mem>> -> memref<!tpu.dma_semaphore, #tpu.memory_space<semaphore_mem>>
    tpu.wait_dma2 semaphore(%196 : memref<!tpu.dma_semaphore, #tpu.memory_space<semaphore_mem>>) src(%193 : memref<1x128xf32, #tpu.memory_space<any>>) dst(%194 : memref<1x128xf32, #tpu.memory_space<vmem>>)
    %c1_i32_171 = arith.constant 1 : i32
    %c2_i32_172 = arith.constant 2 : i32
    %c0_i32_173 = arith.constant 0 : i32
    %197 = tpu.memref_slice %arg5[%48, %c0_i32_173] : memref<16x128xf32, #tpu.memory_space<any>> -> memref<1x128xf32, #tpu.memory_space<any>>
    %c2_i32_174 = arith.constant 2 : i32
    %c0_i32_175 = arith.constant 0 : i32
    %198 = tpu.memref_slice %arg8[%c2_i32_174, %c0_i32_175] : memref<8x128xf32, #tpu.memory_space<vmem>> -> memref<1x128xf32, #tpu.memory_space<vmem>>
    %199 = tpu.memref_slice %arg10[%c1_i32_171, %c2_i32_172] : memref<3x8x!tpu.dma_semaphore, #tpu.memory_space<semaphore_mem>> -> memref<1x1x!tpu.dma_semaphore, #tpu.memory_space<semaphore_mem>>
    %200 = tpu.memref_squeeze %199 : memref<1x1x!tpu.dma_semaphore, #tpu.memory_space<semaphore_mem>> -> memref<!tpu.dma_semaphore, #tpu.memory_space<semaphore_mem>>
    tpu.wait_dma2 semaphore(%200 : memref<!tpu.dma_semaphore, #tpu.memory_space<semaphore_mem>>) src(%197 : memref<1x128xf32, #tpu.memory_space<any>>) dst(%198 : memref<1x128xf32, #tpu.memory_space<vmem>>)
    %c2_i32_176 = arith.constant 2 : i32
    %c2_i32_177 = arith.constant 2 : i32
    %c0_i32_178 = arith.constant 0 : i32
    %201 = tpu.memref_slice %arg4[%51, %c0_i32_178] : memref<64x128xf32, #tpu.memory_space<any>> -> memref<1x128xf32, #tpu.memory_space<any>>
    %c2_i32_179 = arith.constant 2 : i32
    %c0_i32_180 = arith.constant 0 : i32
    %202 = tpu.memref_slice %arg9[%c2_i32_179, %c0_i32_180] : memref<8x128xf32, #tpu.memory_space<vmem>> -> memref<1x128xf32, #tpu.memory_space<vmem>>
    %203 = tpu.memref_slice %arg10[%c2_i32_176, %c2_i32_177] : memref<3x8x!tpu.dma_semaphore, #tpu.memory_space<semaphore_mem>> -> memref<1x1x!tpu.dma_semaphore, #tpu.memory_space<semaphore_mem>>
    %204 = tpu.memref_squeeze %203 : memref<1x1x!tpu.dma_semaphore, #tpu.memory_space<semaphore_mem>> -> memref<!tpu.dma_semaphore, #tpu.memory_space<semaphore_mem>>
    tpu.wait_dma2 semaphore(%204 : memref<!tpu.dma_semaphore, #tpu.memory_space<semaphore_mem>>) src(%201 : memref<1x128xf32, #tpu.memory_space<any>>) dst(%202 : memref<1x128xf32, #tpu.memory_space<vmem>>)
    %c0_i32_181 = arith.constant 0 : i32
    %c3_i32_182 = arith.constant 3 : i32
    %c0_i32_183 = arith.constant 0 : i32
    %205 = tpu.memref_slice %arg4[%66, %c0_i32_183] : memref<64x128xf32, #tpu.memory_space<any>> -> memref<1x128xf32, #tpu.memory_space<any>>
    %c3_i32_184 = arith.constant 3 : i32
    %c0_i32_185 = arith.constant 0 : i32
    %206 = tpu.memref_slice %arg7[%c3_i32_184, %c0_i32_185] : memref<8x128xf32, #tpu.memory_space<vmem>> -> memref<1x128xf32, #tpu.memory_space<vmem>>
    %207 = tpu.memref_slice %arg10[%c0_i32_181, %c3_i32_182] : memref<3x8x!tpu.dma_semaphore, #tpu.memory_space<semaphore_mem>> -> memref<1x1x!tpu.dma_semaphore, #tpu.memory_space<semaphore_mem>>
    %208 = tpu.memref_squeeze %207 : memref<1x1x!tpu.dma_semaphore, #tpu.memory_space<semaphore_mem>> -> memref<!tpu.dma_semaphore, #tpu.memory_space<semaphore_mem>>
    tpu.wait_dma2 semaphore(%208 : memref<!tpu.dma_semaphore, #tpu.memory_space<semaphore_mem>>) src(%205 : memref<1x128xf32, #tpu.memory_space<any>>) dst(%206 : memref<1x128xf32, #tpu.memory_space<vmem>>)
    %c1_i32_186 = arith.constant 1 : i32
    %c3_i32_187 = arith.constant 3 : i32
    %c0_i32_188 = arith.constant 0 : i32
    %209 = tpu.memref_slice %arg5[%69, %c0_i32_188] : memref<16x128xf32, #tpu.memory_space<any>> -> memref<1x128xf32, #tpu.memory_space<any>>
    %c3_i32_189 = arith.constant 3 : i32
    %c0_i32_190 = arith.constant 0 : i32
    %210 = tpu.memref_slice %arg8[%c3_i32_189, %c0_i32_190] : memref<8x128xf32, #tpu.memory_space<vmem>> -> memref<1x128xf32, #tpu.memory_space<vmem>>
    %211 = tpu.memref_slice %arg10[%c1_i32_186, %c3_i32_187] : memref<3x8x!tpu.dma_semaphore, #tpu.memory_space<semaphore_mem>> -> memref<1x1x!tpu.dma_semaphore, #tpu.memory_space<semaphore_mem>>
    %212 = tpu.memref_squeeze %211 : memref<1x1x!tpu.dma_semaphore, #tpu.memory_space<semaphore_mem>> -> memref<!tpu.dma_semaphore, #tpu.memory_space<semaphore_mem>>
    tpu.wait_dma2 semaphore(%212 : memref<!tpu.dma_semaphore, #tpu.memory_space<semaphore_mem>>) src(%209 : memref<1x128xf32, #tpu.memory_space<any>>) dst(%210 : memref<1x128xf32, #tpu.memory_space<vmem>>)
    %c2_i32_191 = arith.constant 2 : i32
    %c3_i32_192 = arith.constant 3 : i32
    %c0_i32_193 = arith.constant 0 : i32
    %213 = tpu.memref_slice %arg4[%72, %c0_i32_193] : memref<64x128xf32, #tpu.memory_space<any>> -> memref<1x128xf32, #tpu.memory_space<any>>
    %c3_i32_194 = arith.constant 3 : i32
    %c0_i32_195 = arith.constant 0 : i32
    %214 = tpu.memref_slice %arg9[%c3_i32_194, %c0_i32_195] : memref<8x128xf32, #tpu.memory_space<vmem>> -> memref<1x128xf32, #tpu.memory_space<vmem>>
    %215 = tpu.memref_slice %arg10[%c2_i32_191, %c3_i32_192] : memref<3x8x!tpu.dma_semaphore, #tpu.memory_space<semaphore_mem>> -> memref<1x1x!tpu.dma_semaphore, #tpu.memory_space<semaphore_mem>>
    %216 = tpu.memref_squeeze %215 : memref<1x1x!tpu.dma_semaphore, #tpu.memory_space<semaphore_mem>> -> memref<!tpu.dma_semaphore, #tpu.memory_space<semaphore_mem>>
    tpu.wait_dma2 semaphore(%216 : memref<!tpu.dma_semaphore, #tpu.memory_space<semaphore_mem>>) src(%213 : memref<1x128xf32, #tpu.memory_space<any>>) dst(%214 : memref<1x128xf32, #tpu.memory_space<vmem>>)
    %c0_i32_196 = arith.constant 0 : i32
    %c4_i32_197 = arith.constant 4 : i32
    %c0_i32_198 = arith.constant 0 : i32
    %217 = tpu.memref_slice %arg4[%87, %c0_i32_198] : memref<64x128xf32, #tpu.memory_space<any>> -> memref<1x128xf32, #tpu.memory_space<any>>
    %c4_i32_199 = arith.constant 4 : i32
    %c0_i32_200 = arith.constant 0 : i32
    %218 = tpu.memref_slice %arg7[%c4_i32_199, %c0_i32_200] : memref<8x128xf32, #tpu.memory_space<vmem>> -> memref<1x128xf32, #tpu.memory_space<vmem>>
    %219 = tpu.memref_slice %arg10[%c0_i32_196, %c4_i32_197] : memref<3x8x!tpu.dma_semaphore, #tpu.memory_space<semaphore_mem>> -> memref<1x1x!tpu.dma_semaphore, #tpu.memory_space<semaphore_mem>>
    %220 = tpu.memref_squeeze %219 : memref<1x1x!tpu.dma_semaphore, #tpu.memory_space<semaphore_mem>> -> memref<!tpu.dma_semaphore, #tpu.memory_space<semaphore_mem>>
    tpu.wait_dma2 semaphore(%220 : memref<!tpu.dma_semaphore, #tpu.memory_space<semaphore_mem>>) src(%217 : memref<1x128xf32, #tpu.memory_space<any>>) dst(%218 : memref<1x128xf32, #tpu.memory_space<vmem>>)
    %c1_i32_201 = arith.constant 1 : i32
    %c4_i32_202 = arith.constant 4 : i32
    %c0_i32_203 = arith.constant 0 : i32
    %221 = tpu.memref_slice %arg5[%90, %c0_i32_203] : memref<16x128xf32, #tpu.memory_space<any>> -> memref<1x128xf32, #tpu.memory_space<any>>
    %c4_i32_204 = arith.constant 4 : i32
    %c0_i32_205 = arith.constant 0 : i32
    %222 = tpu.memref_slice %arg8[%c4_i32_204, %c0_i32_205] : memref<8x128xf32, #tpu.memory_space<vmem>> -> memref<1x128xf32, #tpu.memory_space<vmem>>
    %223 = tpu.memref_slice %arg10[%c1_i32_201, %c4_i32_202] : memref<3x8x!tpu.dma_semaphore, #tpu.memory_space<semaphore_mem>> -> memref<1x1x!tpu.dma_semaphore, #tpu.memory_space<semaphore_mem>>
    %224 = tpu.memref_squeeze %223 : memref<1x1x!tpu.dma_semaphore, #tpu.memory_space<semaphore_mem>> -> memref<!tpu.dma_semaphore, #tpu.memory_space<semaphore_mem>>
    tpu.wait_dma2 semaphore(%224 : memref<!tpu.dma_semaphore, #tpu.memory_space<semaphore_mem>>) src(%221 : memref<1x128xf32, #tpu.memory_space<any>>) dst(%222 : memref<1x128xf32, #tpu.memory_space<vmem>>)
    %c2_i32_206 = arith.constant 2 : i32
    %c4_i32_207 = arith.constant 4 : i32
    %c0_i32_208 = arith.constant 0 : i32
    %225 = tpu.memref_slice %arg4[%93, %c0_i32_208] : memref<64x128xf32, #tpu.memory_space<any>> -> memref<1x128xf32, #tpu.memory_space<any>>
    %c4_i32_209 = arith.constant 4 : i32
    %c0_i32_210 = arith.constant 0 : i32
    %226 = tpu.memref_slice %arg9[%c4_i32_209, %c0_i32_210] : memref<8x128xf32, #tpu.memory_space<vmem>> -> memref<1x128xf32, #tpu.memory_space<vmem>>
    %227 = tpu.memref_slice %arg10[%c2_i32_206, %c4_i32_207] : memref<3x8x!tpu.dma_semaphore, #tpu.memory_space<semaphore_mem>> -> memref<1x1x!tpu.dma_semaphore, #tpu.memory_space<semaphore_mem>>
    %228 = tpu.memref_squeeze %227 : memref<1x1x!tpu.dma_semaphore, #tpu.memory_space<semaphore_mem>> -> memref<!tpu.dma_semaphore, #tpu.memory_space<semaphore_mem>>
    tpu.wait_dma2 semaphore(%228 : memref<!tpu.dma_semaphore, #tpu.memory_space<semaphore_mem>>) src(%225 : memref<1x128xf32, #tpu.memory_space<any>>) dst(%226 : memref<1x128xf32, #tpu.memory_space<vmem>>)
    %c0_i32_211 = arith.constant 0 : i32
    %c5_i32_212 = arith.constant 5 : i32
    %c0_i32_213 = arith.constant 0 : i32
    %229 = tpu.memref_slice %arg4[%108, %c0_i32_213] : memref<64x128xf32, #tpu.memory_space<any>> -> memref<1x128xf32, #tpu.memory_space<any>>
    %c5_i32_214 = arith.constant 5 : i32
    %c0_i32_215 = arith.constant 0 : i32
    %230 = tpu.memref_slice %arg7[%c5_i32_214, %c0_i32_215] : memref<8x128xf32, #tpu.memory_space<vmem>> -> memref<1x128xf32, #tpu.memory_space<vmem>>
    %231 = tpu.memref_slice %arg10[%c0_i32_211, %c5_i32_212] : memref<3x8x!tpu.dma_semaphore, #tpu.memory_space<semaphore_mem>> -> memref<1x1x!tpu.dma_semaphore, #tpu.memory_space<semaphore_mem>>
    %232 = tpu.memref_squeeze %231 : memref<1x1x!tpu.dma_semaphore, #tpu.memory_space<semaphore_mem>> -> memref<!tpu.dma_semaphore, #tpu.memory_space<semaphore_mem>>
    tpu.wait_dma2 semaphore(%232 : memref<!tpu.dma_semaphore, #tpu.memory_space<semaphore_mem>>) src(%229 : memref<1x128xf32, #tpu.memory_space<any>>) dst(%230 : memref<1x128xf32, #tpu.memory_space<vmem>>)
    %c1_i32_216 = arith.constant 1 : i32
    %c5_i32_217 = arith.constant 5 : i32
    %c0_i32_218 = arith.constant 0 : i32
    %233 = tpu.memref_slice %arg5[%111, %c0_i32_218] : memref<16x128xf32, #tpu.memory_space<any>> -> memref<1x128xf32, #tpu.memory_space<any>>
    %c5_i32_219 = arith.constant 5 : i32
    %c0_i32_220 = arith.constant 0 : i32
    %234 = tpu.memref_slice %arg8[%c5_i32_219, %c0_i32_220] : memref<8x128xf32, #tpu.memory_space<vmem>> -> memref<1x128xf32, #tpu.memory_space<vmem>>
    %235 = tpu.memref_slice %arg10[%c1_i32_216, %c5_i32_217] : memref<3x8x!tpu.dma_semaphore, #tpu.memory_space<semaphore_mem>> -> memref<1x1x!tpu.dma_semaphore, #tpu.memory_space<semaphore_mem>>
    %236 = tpu.memref_squeeze %235 : memref<1x1x!tpu.dma_semaphore, #tpu.memory_space<semaphore_mem>> -> memref<!tpu.dma_semaphore, #tpu.memory_space<semaphore_mem>>
    tpu.wait_dma2 semaphore(%236 : memref<!tpu.dma_semaphore, #tpu.memory_space<semaphore_mem>>) src(%233 : memref<1x128xf32, #tpu.memory_space<any>>) dst(%234 : memref<1x128xf32, #tpu.memory_space<vmem>>)
    %c2_i32_221 = arith.constant 2 : i32
    %c5_i32_222 = arith.constant 5 : i32
    %c0_i32_223 = arith.constant 0 : i32
    %237 = tpu.memref_slice %arg4[%114, %c0_i32_223] : memref<64x128xf32, #tpu.memory_space<any>> -> memref<1x128xf32, #tpu.memory_space<any>>
    %c5_i32_224 = arith.constant 5 : i32
    %c0_i32_225 = arith.constant 0 : i32
    %238 = tpu.memref_slice %arg9[%c5_i32_224, %c0_i32_225] : memref<8x128xf32, #tpu.memory_space<vmem>> -> memref<1x128xf32, #tpu.memory_space<vmem>>
    %239 = tpu.memref_slice %arg10[%c2_i32_221, %c5_i32_222] : memref<3x8x!tpu.dma_semaphore, #tpu.memory_space<semaphore_mem>> -> memref<1x1x!tpu.dma_semaphore, #tpu.memory_space<semaphore_mem>>
    %240 = tpu.memref_squeeze %239 : memref<1x1x!tpu.dma_semaphore, #tpu.memory_space<semaphore_mem>> -> memref<!tpu.dma_semaphore, #tpu.memory_space<semaphore_mem>>
    tpu.wait_dma2 semaphore(%240 : memref<!tpu.dma_semaphore, #tpu.memory_space<semaphore_mem>>) src(%237 : memref<1x128xf32, #tpu.memory_space<any>>) dst(%238 : memref<1x128xf32, #tpu.memory_space<vmem>>)
    %c0_i32_226 = arith.constant 0 : i32
    %c6_i32_227 = arith.constant 6 : i32
    %c0_i32_228 = arith.constant 0 : i32
    %241 = tpu.memref_slice %arg4[%129, %c0_i32_228] : memref<64x128xf32, #tpu.memory_space<any>> -> memref<1x128xf32, #tpu.memory_space<any>>
    %c6_i32_229 = arith.constant 6 : i32
    %c0_i32_230 = arith.constant 0 : i32
    %242 = tpu.memref_slice %arg7[%c6_i32_229, %c0_i32_230] : memref<8x128xf32, #tpu.memory_space<vmem>> -> memref<1x128xf32, #tpu.memory_space<vmem>>
    %243 = tpu.memref_slice %arg10[%c0_i32_226, %c6_i32_227] : memref<3x8x!tpu.dma_semaphore, #tpu.memory_space<semaphore_mem>> -> memref<1x1x!tpu.dma_semaphore, #tpu.memory_space<semaphore_mem>>
    %244 = tpu.memref_squeeze %243 : memref<1x1x!tpu.dma_semaphore, #tpu.memory_space<semaphore_mem>> -> memref<!tpu.dma_semaphore, #tpu.memory_space<semaphore_mem>>
    tpu.wait_dma2 semaphore(%244 : memref<!tpu.dma_semaphore, #tpu.memory_space<semaphore_mem>>) src(%241 : memref<1x128xf32, #tpu.memory_space<any>>) dst(%242 : memref<1x128xf32, #tpu.memory_space<vmem>>)
    %c1_i32_231 = arith.constant 1 : i32
    %c6_i32_232 = arith.constant 6 : i32
    %c0_i32_233 = arith.constant 0 : i32
    %245 = tpu.memref_slice %arg5[%132, %c0_i32_233] : memref<16x128xf32, #tpu.memory_space<any>> -> memref<1x128xf32, #tpu.memory_space<any>>
    %c6_i32_234 = arith.constant 6 : i32
    %c0_i32_235 = arith.constant 0 : i32
    %246 = tpu.memref_slice %arg8[%c6_i32_234, %c0_i32_235] : memref<8x128xf32, #tpu.memory_space<vmem>> -> memref<1x128xf32, #tpu.memory_space<vmem>>
    %247 = tpu.memref_slice %arg10[%c1_i32_231, %c6_i32_232] : memref<3x8x!tpu.dma_semaphore, #tpu.memory_space<semaphore_mem>> -> memref<1x1x!tpu.dma_semaphore, #tpu.memory_space<semaphore_mem>>
    %248 = tpu.memref_squeeze %247 : memref<1x1x!tpu.dma_semaphore, #tpu.memory_space<semaphore_mem>> -> memref<!tpu.dma_semaphore, #tpu.memory_space<semaphore_mem>>
    tpu.wait_dma2 semaphore(%248 : memref<!tpu.dma_semaphore, #tpu.memory_space<semaphore_mem>>) src(%245 : memref<1x128xf32, #tpu.memory_space<any>>) dst(%246 : memref<1x128xf32, #tpu.memory_space<vmem>>)
    %c2_i32_236 = arith.constant 2 : i32
    %c6_i32_237 = arith.constant 6 : i32
    %c0_i32_238 = arith.constant 0 : i32
    %249 = tpu.memref_slice %arg4[%135, %c0_i32_238] : memref<64x128xf32, #tpu.memory_space<any>> -> memref<1x128xf32, #tpu.memory_space<any>>
    %c6_i32_239 = arith.constant 6 : i32
    %c0_i32_240 = arith.constant 0 : i32
    %250 = tpu.memref_slice %arg9[%c6_i32_239, %c0_i32_240] : memref<8x128xf32, #tpu.memory_space<vmem>> -> memref<1x128xf32, #tpu.memory_space<vmem>>
    %251 = tpu.memref_slice %arg10[%c2_i32_236, %c6_i32_237] : memref<3x8x!tpu.dma_semaphore, #tpu.memory_space<semaphore_mem>> -> memref<1x1x!tpu.dma_semaphore, #tpu.memory_space<semaphore_mem>>
    %252 = tpu.memref_squeeze %251 : memref<1x1x!tpu.dma_semaphore, #tpu.memory_space<semaphore_mem>> -> memref<!tpu.dma_semaphore, #tpu.memory_space<semaphore_mem>>
    tpu.wait_dma2 semaphore(%252 : memref<!tpu.dma_semaphore, #tpu.memory_space<semaphore_mem>>) src(%249 : memref<1x128xf32, #tpu.memory_space<any>>) dst(%250 : memref<1x128xf32, #tpu.memory_space<vmem>>)
    %c0_i32_241 = arith.constant 0 : i32
    %c7_i32_242 = arith.constant 7 : i32
    %c0_i32_243 = arith.constant 0 : i32
    %253 = tpu.memref_slice %arg4[%150, %c0_i32_243] : memref<64x128xf32, #tpu.memory_space<any>> -> memref<1x128xf32, #tpu.memory_space<any>>
    %c7_i32_244 = arith.constant 7 : i32
    %c0_i32_245 = arith.constant 0 : i32
    %254 = tpu.memref_slice %arg7[%c7_i32_244, %c0_i32_245] : memref<8x128xf32, #tpu.memory_space<vmem>> -> memref<1x128xf32, #tpu.memory_space<vmem>>
    %255 = tpu.memref_slice %arg10[%c0_i32_241, %c7_i32_242] : memref<3x8x!tpu.dma_semaphore, #tpu.memory_space<semaphore_mem>> -> memref<1x1x!tpu.dma_semaphore, #tpu.memory_space<semaphore_mem>>
    %256 = tpu.memref_squeeze %255 : memref<1x1x!tpu.dma_semaphore, #tpu.memory_space<semaphore_mem>> -> memref<!tpu.dma_semaphore, #tpu.memory_space<semaphore_mem>>
    tpu.wait_dma2 semaphore(%256 : memref<!tpu.dma_semaphore, #tpu.memory_space<semaphore_mem>>) src(%253 : memref<1x128xf32, #tpu.memory_space<any>>) dst(%254 : memref<1x128xf32, #tpu.memory_space<vmem>>)
    %c1_i32_246 = arith.constant 1 : i32
    %c7_i32_247 = arith.constant 7 : i32
    %c0_i32_248 = arith.constant 0 : i32
    %257 = tpu.memref_slice %arg5[%153, %c0_i32_248] : memref<16x128xf32, #tpu.memory_space<any>> -> memref<1x128xf32, #tpu.memory_space<any>>
    %c7_i32_249 = arith.constant 7 : i32
    %c0_i32_250 = arith.constant 0 : i32
    %258 = tpu.memref_slice %arg8[%c7_i32_249, %c0_i32_250] : memref<8x128xf32, #tpu.memory_space<vmem>> -> memref<1x128xf32, #tpu.memory_space<vmem>>
    %259 = tpu.memref_slice %arg10[%c1_i32_246, %c7_i32_247] : memref<3x8x!tpu.dma_semaphore, #tpu.memory_space<semaphore_mem>> -> memref<1x1x!tpu.dma_semaphore, #tpu.memory_space<semaphore_mem>>
    %260 = tpu.memref_squeeze %259 : memref<1x1x!tpu.dma_semaphore, #tpu.memory_space<semaphore_mem>> -> memref<!tpu.dma_semaphore, #tpu.memory_space<semaphore_mem>>
    tpu.wait_dma2 semaphore(%260 : memref<!tpu.dma_semaphore, #tpu.memory_space<semaphore_mem>>) src(%257 : memref<1x128xf32, #tpu.memory_space<any>>) dst(%258 : memref<1x128xf32, #tpu.memory_space<vmem>>)
    %c2_i32_251 = arith.constant 2 : i32
    %c7_i32_252 = arith.constant 7 : i32
    %c0_i32_253 = arith.constant 0 : i32
    %261 = tpu.memref_slice %arg4[%156, %c0_i32_253] : memref<64x128xf32, #tpu.memory_space<any>> -> memref<1x128xf32, #tpu.memory_space<any>>
    %c7_i32_254 = arith.constant 7 : i32
    %c0_i32_255 = arith.constant 0 : i32
    %262 = tpu.memref_slice %arg9[%c7_i32_254, %c0_i32_255] : memref<8x128xf32, #tpu.memory_space<vmem>> -> memref<1x128xf32, #tpu.memory_space<vmem>>
    %263 = tpu.memref_slice %arg10[%c2_i32_251, %c7_i32_252] : memref<3x8x!tpu.dma_semaphore, #tpu.memory_space<semaphore_mem>> -> memref<1x1x!tpu.dma_semaphore, #tpu.memory_space<semaphore_mem>>
    %264 = tpu.memref_squeeze %263 : memref<1x1x!tpu.dma_semaphore, #tpu.memory_space<semaphore_mem>> -> memref<!tpu.dma_semaphore, #tpu.memory_space<semaphore_mem>>
    tpu.wait_dma2 semaphore(%264 : memref<!tpu.dma_semaphore, #tpu.memory_space<semaphore_mem>>) src(%261 : memref<1x128xf32, #tpu.memory_space<any>>) dst(%262 : memref<1x128xf32, #tpu.memory_space<vmem>>)
    %c0 = arith.constant 0 : index
    %c0_256 = arith.constant 0 : index
    %265 = vector.load %arg7[%c0, %c0_256] : memref<8x128xf32, #tpu.memory_space<vmem>>, vector<8x128xf32>
    %c0_257 = arith.constant 0 : index
    %c0_258 = arith.constant 0 : index
    %266 = vector.load %arg8[%c0_257, %c0_258] : memref<8x128xf32, #tpu.memory_space<vmem>>, vector<8x128xf32>
    %267 = arith.addf %265, %266 : vector<8x128xf32>
    %c0_259 = arith.constant 0 : index
    %c0_260 = arith.constant 0 : index
    %268 = vector.load %arg9[%c0_259, %c0_260] : memref<8x128xf32, #tpu.memory_space<vmem>>, vector<8x128xf32>
    %269 = arith.subf %267, %268 : vector<8x128xf32>
    %c0_261 = arith.constant 0 : index
    %c0_262 = arith.constant 0 : index
    %270 = vector.load %arg6[%c0_261, %c0_262] : memref<8x128xf32, #tpu.memory_space<vmem>>, vector<8x128xf32>
    tpu.vector_store %arg6[%c0_261, %c0_262], %269 {strides = array<i32>} : memref<8x128xf32, #tpu.memory_space<vmem>>, vector<8x128xf32>,
    return
  }
  func.func @transform_2(%arg0: i32, %arg1: memref<16xi32, #tpu.memory_space<smem>>, %arg2: memref<16xi32, #tpu.memory_space<smem>>, %arg3: memref<16xi32, #tpu.memory_space<smem>>) -> (i32, i32) {
    %c0_i32 = arith.constant 0 : i32
    %c0_i32_0 = arith.constant 0 : i32
    return %arg0, %c0_i32 : i32, i32
  }
}

</mosaic_0001>

<bundles_post_ra>
// kernel: tpu_custom_call.1
= control target key start
LH: loop header
LB: loop body
LE: loop exit
PB: predicated region body
PF: predicated region fallthrough
CT: control target
= control target key end

     0   :  { %s2207_s0 = inlined_call_operand.hbm [shape: s32[16], index: 0, kind: input, shape index: {}]   ;;  %s2208_s3 = inlined_call_operand.hbm [shape: f32[64,128], index: 3, kind: input, shape index: {}]   ;;  %s2209_s4 = inlined_call_operand.hbm [shape: f32[16,128], index: 4, kind: input, shape index: {}]   ;;  %s2210_s5 = inlined_call_operand.hbm [shape: f32[16,128], index: 5, kind: output, shape index: {}]   ;;  %s2211_s1 = inlined_call_operand.vmem [shape: s32[16], index: 1, kind: input, shape index: {}]   ;;  %s2212_s2 = inlined_call_operand.vmem [shape: s32[16], index: 2, kind: input, shape index: {}]  }
   0x1   :  { %2221 = sst [smem:[#allocation93_spill]] %s2210_s5  ;;  %s893_s20 = scalar_lea.hbm %s2207_s0, 16 }
   0x2   :  { %p894_p0 = scmp.ne.s32.totalorder %s2207_s0, %s893_s20  ;;  %p897_p1 = scmp.lt.u32.totalorder %s893_s20, %s2207_s0 }
   0x4   :  { %p899_p2 = pnand %p897_p1, %p894_p0 }
   0x6   :  { %902 = shalt.err (!%p899_p2)  }
   0x7   :  { %s1609_s25 = smov [#allocation7]   ;;  %s12_s30 = sshll.u32 %s2211_s1, 4  ;;  %s13_s30 = int_to_ptr.vmem [resolvable:$true] %s12_s30 }
   0x8   :  { %11 = dma.hbm_to_smem %s2207_s0, 16, %s1609_s25, [#allocation6] }
   0x9   :  { %s16_s8 = sshll.u32 %s2212_s2, 4  ;;  %s903_s9 = scalar_lea.vmem %s13_s30, 16  ;;  %s17_s8 = int_to_ptr.vmem [resolvable:$true] %s16_s8 }
   0xa   :  { %p904_p3 = scmp.ne.s32.totalorder %s13_s30, %s903_s9  ;;  %p908_p4 = scmp.lt.s32.totalorder %s13_s30, %s13_s30 }
   0xb   :  { %p909_p5 = scmp.lt.s32.totalorder %s903_s9, %s903_s9 }
   0xd   :  { %p910_p6 = por %p909_p5, %p908_p4 }
   0xf   :  { %p911_p7 = pnand %p910_p6, %p904_p3 }
  0x11   :  { %914 = shalt.err (!%p911_p7)  }
  0x12   :  { %s1610_s10 = smov [#allocation8]   ;;  %s915_s0 = scalar_lea.vmem %s17_s8, 16 }
  0x13   :  { %15 = dma.vmem_to_smem %s13_s30, 16, %s1610_s10, [#allocation6] }
  0x14   :  { %p916_p8 = scmp.ne.s32.totalorder %s17_s8, %s915_s0  ;;  %p920_p9 = scmp.lt.s32.totalorder %s17_s8, %s17_s8 }
  0x15   :  { %p921_p10 = scmp.lt.s32.totalorder %s915_s0, %s915_s0 }
  0x17   :  { %p922_p11 = por %p921_p10, %p920_p9 }
  0x19   :  { %p923_p12 = pnand %p922_p11, %p916_p8 }
  0x1b   :  { %926 = shalt.err (!%p923_p12)  }
  0x1c   :  { %s1611_s1 = smov [#allocation9]  }
  0x1d   :  { %19 = dma.vmem_to_smem %s17_s8, 16, %s1611_s1, [#allocation6] }
  0x1e   :  { %1543 = dma.done.wait [#allocation6], 48 }
  0x1f   :  { %1544 = vsyncadd [#allocation6], 4294967248 }
  0x20   :  { %21 = sfence }
  0x21   :  { %22 = vsyncpa [#allocation11], 0 }
  0x22   :  { %24 = vsyncpa [#allocation11 + $0x1], 0  ;;  %s1685_s2 = smov 0   ;;  %s1687_s11 = smov 0  }
  0x23   :  { %s1689_s12 = smov 0  }
  0x24 LB: > { %2222 = sst [smem:[#allocation88_spill]] %s1599_s2  ;;  %s778_s13 = sadd.s32 4294967295, %s1607_s12   ;;  %s1607_s12 = sphi %s1689_s12, %s2234_s12   ;;  %s1603_s11 = sphi %s1687_s11, %s2237_s11   ;;  %s1599_s2 = sphi %s1685_s2, %s2236_s2  }
  0x25   : > { %s1702_s14 = sadd.s32 1, %s1607_s12   ;;  %s36_s16 = sadd.s32 1, %s1603_s11 }
  0x26   : > { %2223 = sst [smem:[#allocation89_spill]] %s1702_s14  ;;  %s33_s15 = ssub.s32 %s1607_s12, %s1702_s14 }
  0x27   : > { %p34_p13 = scmp.eq.s32.totalorder %s33_s15, 0  ;;  %p779_p0 = scmp.ne.s32.totalorder %s33_s15, 0 }
  0x28   : > { %p40_p1 = scmp.eq.s32.totalorder %s1607_s12, 1  ;;  %p45_p2 = scmp.ne.s32.totalorder %s1603_s11, %s1599_s2 }
  0x29   : > { %s1711_s17 = scalar_select %p34_p13, %s1603_s11, %s36_s16  }
  0x2a   : > { %p1713_p3 = por %p779_p0, %p40_p1  ;;  %p46_p4 = scmp.eq.s32.totalorder %s778_s13, 1 }
  0x2b   : > { %2224 = sst [smem:[#allocation90_spill]] %s1711_s17  ;;  %p780_p6 = scmp.ge.s32.totalorder %s1607_s12, 2 }
  0x2c   : > { %s2225_s18 = scalar_select %p1713_p3, 1, 0 }
  0x2d   : > { %p1717_p5 = por %p46_p4, %p45_p2  ;;  %55 = sbr.rel (%p780_p6) target bundleno = 657 (0x291), region = 12 }
  0x2e   : > { %2226 = sst [smem:[#allocation91_spill]] %s2225_s18  ;;  %s2213_s20 = sand.u32 (!%p780_p6), 1, %s1603_s11  }
  0x2f   : > { %s2227_s19 = scalar_select %p1717_p5, 1, 0 }
  0x30   : > { %s1724_s21 = sshll.u32 (!%p780_p6), %s1607_s12, 3  ;;  %s1728_s22 = sshll.u32 (!%p780_p6), %s2213_s20, 3 }
  0x31   : > { %2228 = sst [smem:[#allocation92_spill]] %s2227_s19  ;;  %s1612_s24 = smov (!%p780_p6), [#allocation2]  }
  0x32   : > { %s64_s23 = sld [smem:[#allocation7 + %s1724_s21]] (!%p780_p6)  ;;  %s76_s25 = sshll.u32 (!%p780_p6), %s1612_s24, 4  ;;  %s1734_s25 = int_to_ptr.vmem [resolvable:$true] %s76_s25 }
  0x33   : > { %s1732_s26 = sld [smem:[#allocation8 + %s1724_s21]] (!%p780_p6)  ;;  %s1613_s27 = smov (!%p780_p6), [#allocation3]  }
  0x34   : > { %s90_s28 = sshll.u32 %s1613_s27, 4  ;;  %s1737_s29 = sld [smem:[#allocation9 + %s1724_s21]]  ;;  %s1739_s28 = int_to_ptr.vmem [resolvable:$true] %s90_s28 }
  0x35   : > { %s1614_s6 = smov [#allocation4]   ;;  %s1749_s15 = scalar_lea.hbm %s2208_s3, 1024 }
  0x36   : > { %s104_s7 = sshll.u32 %s1614_s6, 4  ;;  %s1744_s7 = int_to_ptr.vmem [resolvable:$true] %s104_s7 }
  0x38   : > { %s783_s30 = sshll.u32 %s64_s23, 4 }
  0x39   : > { %s68_s10 = scalar_lea.hbm %s2208_s3, %s783_s30 }
  0x3a   : > { %s927_s0 = scalar_lea.hbm %s68_s10, 16  ;;  %p930_p8 = scmp.lt.u32.totalorder %s68_s10, %s2208_s3 }
  0x3b   : > { %p928_p7 = scmp.ne.s32.totalorder %s68_s10, %s927_s0  ;;  %p931_p9 = scmp.lt.u32.totalorder %s1749_s15, %s927_s0 }
  0x3c   : > { %p933_p11 = scmp.lt.u32.totalorder %s927_s0, %s68_s10 }
  0x3d   : > { %p932_p10 = por %p931_p9, %p930_p8 }
  0x3f   : > { %p934_p12 = por %p933_p11, %p932_p10 }
  0x41   : > { %p935_p13 = pnand %p934_p12, %p928_p7 }
  0x43   : > { %938 = shalt.err (!%p935_p13)  }
  0x44   : > { %s939_s23 = scalar_lea.vmem %s1734_s25, 16  ;;  %s1758_s27 = scalar_lea.vmem %s1734_s25, 128 }
  0x45   : > { %p940_p0 = scmp.ne.s32.totalorder %s1734_s25, %s939_s23  ;;  %p944_p1 = scmp.lt.s32.totalorder %s1734_s25, %s1734_s25 }
  0x46   : > { %p945_p2 = scmp.lt.s32.totalorder %s1758_s27, %s939_s23 }
  0x48   : > { %p946_p4 = por %p945_p2, %p944_p1 }
  0x4a   : > { %p947_p6 = pnand %p946_p4, %p940_p0 }
  0x4c   : > { %950 = shalt.err (!%p947_p6)  }
  0x4d   : > { %79 = dma.hbm_to_vmem [thread:$0]  %s68_s10, 16, %s1734_s25, [#allocation5] }
  0x4e   : > { %s784_s30 = sshll.u32 %s1732_s26, 4  ;;  %s1766_s6 = sadd.s32 1, %s1724_s21 }
  0x4f   : > { %s81_s0 = scalar_lea.hbm %s2209_s4, %s784_s30  ;;  %s785_s1 = sshll.u32 %s1737_s29, 4 }
  0x50   : > { %s951_s13 = scalar_lea.hbm %s81_s0, 16  ;;  %s1775_s23 = scalar_lea.hbm %s2209_s4, 256 }
  0x51   : > { %p952_p7 = scmp.ne.s32.totalorder %s81_s0, %s951_s13  ;;  %p954_p8 = scmp.lt.u32.totalorder %s81_s0, %s2209_s4 }
  0x52   : > { %p955_p9 = scmp.lt.u32.totalorder %s1775_s23, %s951_s13  ;;  %p957_p11 = scmp.lt.u32.totalorder %s951_s13, %s81_s0 }
  0x54   : > { %p956_p10 = por %p955_p9, %p954_p8 }
  0x56   : > { %p958_p12 = por %p957_p11, %p956_p10 }
  0x58   : > { %p959_p13 = pnand %p958_p12, %p952_p7 }
  0x5a   : > { %962 = shalt.err (!%p959_p13)  }
  0x5b   : > { %s963_s26 = scalar_lea.vmem %s1739_s28, 16  ;;  %s1784_s29 = scalar_lea.vmem %s1739_s28, 128 }
  0x5c   : > { %p964_p0 = scmp.ne.s32.totalorder %s1739_s28, %s963_s26  ;;  %p968_p1 = scmp.lt.s32.totalorder %s1739_s28, %s1739_s28 }
  0x5d   : > { %p969_p2 = scmp.lt.s32.totalorder %s1784_s29, %s963_s26 }
  0x5f   : > { %p970_p4 = por %p969_p2, %p968_p1 }
  0x61   : > { %p971_p6 = pnand %p970_p4, %p964_p0 }
  0x63   : > { %974 = shalt.err (!%p971_p6)  }
  0x64   : > { %93 = dma.hbm_to_vmem [thread:$0]  %s81_s0, 16, %s1739_s28, [#allocation5 + $0x8] }
  0x65   : > { %s95_s10 = scalar_lea.hbm %s2208_s3, %s785_s1  ;;  %s1794_s30 = sld [smem:[#allocation7 + %s1766_s6]] }
  0x66   : > { %s975_s8 = scalar_lea.hbm %s95_s10, 16  ;;  %p978_p8 = scmp.lt.u32.totalorder %s95_s10, %s2208_s3 }
  0x67   : > { %p976_p7 = scmp.ne.s32.totalorder %s95_s10, %s975_s8  ;;  %p979_p9 = scmp.lt.u32.totalorder %s1749_s15, %s975_s8 }
  0x68   : > { %p981_p11 = scmp.lt.u32.totalorder %s975_s8, %s95_s10 }
  0x69   : > { %p980_p10 = por %p979_p9, %p978_p8 }
  0x6b   : > { %p982_p12 = por %p981_p11, %p980_p10 }
  0x6d   : > { %p983_p13 = pnand %p982_p12, %p976_p7 }
  0x6f   : > { %986 = shalt.err (!%p983_p13)  }
  0x70   : > { %s987_s0 = scalar_lea.vmem %s1744_s7, 16  ;;  %s1803_s1 = scalar_lea.vmem %s1744_s7, 128 }
  0x71   : > { %p988_p0 = scmp.ne.s32.totalorder %s1744_s7, %s987_s0  ;;  %p992_p1 = scmp.lt.s32.totalorder %s1744_s7, %s1744_s7 }
  0x72   : > { %p993_p2 = scmp.lt.s32.totalorder %s1803_s1, %s987_s0 }
  0x74   : > { %p994_p4 = por %p993_p2, %p992_p1 }
  0x76   : > { %p995_p6 = pnand %p994_p4, %p988_p0 }
  0x78   : > { %998 = shalt.err (!%p995_p6)  }
  0x79   : > { %107 = dma.hbm_to_vmem [thread:$0]  %s95_s10, 16, %s1744_s7, [#allocation5 + $0x10] }
  0x7a   : > { %s1810_s16 = sld [smem:[#allocation8 + %s1766_s6]]  ;;  %s1615_s24 = smov [#allocation2 + $0x1]  }
  0x7b   : > { %s123_s26 = sshll.u32 %s1615_s24, 4  ;;  %s1616_s17 = smov [#allocation3 + $0x1]   ;;  %s124_s26 = int_to_ptr.vmem [resolvable:$true] %s123_s26 }
  0x7c   : > { %s138_s20 = sshll.u32 %s1616_s17, 4  ;;  %s1815_s8 = sld [smem:[#allocation9 + %s1766_s6]]  ;;  %s1812_s20 = int_to_ptr.vmem [resolvable:$true] %s138_s20 }
  0x7d   : > { %s786_s9 = sshll.u32 %s1794_s30, 4  ;;  %s1617_s19 = smov [#allocation4 + $0x1]  }
  0x7e   : > { %s113_s14 = scalar_lea.hbm %s2208_s3, %s786_s9  ;;  %s153_s2 = sshll.u32 %s1617_s19, 4  ;;  %s1828_s2 = int_to_ptr.vmem [resolvable:$true] %s153_s2 }
  0x7f   : > { %s999_s10 = scalar_lea.hbm %s113_s14, 16  ;;  %p1002_p8 = scmp.lt.u32.totalorder %s113_s14, %s2208_s3 }
  0x80   : > { %p1000_p7 = scmp.ne.s32.totalorder %s113_s14, %s999_s10  ;;  %p1003_p9 = scmp.lt.u32.totalorder %s1749_s15, %s999_s10 }
  0x81   : > { %p1005_p11 = scmp.lt.u32.totalorder %s999_s10, %s113_s14 }
  0x82   : > { %p1004_p10 = por %p1003_p9, %p1002_p8 }
  0x84   : > { %p1006_p12 = por %p1005_p11, %p1004_p10 }
  0x86   : > { %p1007_p13 = pnand %p1006_p12, %p1000_p7 }
  0x88   : > { %1010 = shalt.err (!%p1007_p13)  }
  0x89   : > { %s1011_s6 = scalar_lea.vmem %s124_s26, 16  ;;  %p1016_p1 = scmp.lt.s32.totalorder %s124_s26, %s1734_s25 }
  0x8a   : > { %p1012_p0 = scmp.ne.s32.totalorder %s124_s26, %s1011_s6  ;;  %p1017_p2 = scmp.lt.s32.totalorder %s1758_s27, %s1011_s6 }
  0x8c   : > { %p1018_p4 = por %p1017_p2, %p1016_p1 }
  0x8e   : > { %p1019_p6 = pnand %p1018_p4, %p1012_p0 }
  0x90   : > { %1022 = shalt.err (!%p1019_p6)  }
  0x91   : > { %126 = dma.hbm_to_vmem [thread:$0]  %s113_s14, 16, %s124_s26, [#allocation5 + $0x1] }
  0x92   : > { %s787_s5 = sshll.u32 %s1810_s16, 4  ;;  %s1834_s24 = sadd.s32 2, %s1724_s21 }
  0x93   : > { %s128_s30 = scalar_lea.hbm %s2209_s4, %s787_s5 }
  0x94   : > { %s1023_s17 = scalar_lea.hbm %s128_s30, 16  ;;  %p1026_p8 = scmp.lt.u32.totalorder %s128_s30, %s2209_s4 }
  0x95   : > { %p1024_p7 = scmp.ne.s32.totalorder %s128_s30, %s1023_s17  ;;  %p1027_p9 = scmp.lt.u32.totalorder %s1775_s23, %s1023_s17 }
  0x96   : > { %p1029_p11 = scmp.lt.u32.totalorder %s1023_s17, %s128_s30 }
  0x97   : > { %p1028_p10 = por %p1027_p9, %p1026_p8 }
  0x99   : > { %p1030_p12 = por %p1029_p11, %p1028_p10 }
  0x9b   : > { %p1031_p13 = pnand %p1030_p12, %p1024_p7 }
  0x9d   : > { %1034 = shalt.err (!%p1031_p13)  }
  0x9e   : > { %s1035_s14 = scalar_lea.vmem %s1812_s20, 16  ;;  %p1040_p1 = scmp.lt.s32.totalorder %s1812_s20, %s1739_s28 }
  0x9f   : > { %p1036_p0 = scmp.ne.s32.totalorder %s1812_s20, %s1035_s14  ;;  %p1041_p2 = scmp.lt.s32.totalorder %s1784_s29, %s1035_s14 }
  0xa1   : > { %p1042_p4 = por %p1041_p2, %p1040_p1 }
  0xa3   : > { %p1043_p6 = pnand %p1042_p4, %p1036_p0 }
  0xa5   : > { %1046 = shalt.err (!%p1043_p6)  }
  0xa6   : > { %141 = dma.hbm_to_vmem [thread:$0]  %s128_s30, 16, %s1812_s20, [#allocation5 + $0x9] }
  0xa7   : > { %s788_s16 = sshll.u32 %s1815_s8, 4  ;;  %s1848_s26 = sld [smem:[#allocation7 + %s1834_s24]] }
  0xa8   : > { %s143_s6 = scalar_lea.hbm %s2208_s3, %s788_s16 }
  0xa9   : > { %s1047_s5 = scalar_lea.hbm %s143_s6, 16  ;;  %p1050_p8 = scmp.lt.u32.totalorder %s143_s6, %s2208_s3 }
  0xaa   : > { %p1048_p7 = scmp.ne.s32.totalorder %s143_s6, %s1047_s5  ;;  %p1051_p9 = scmp.lt.u32.totalorder %s1749_s15, %s1047_s5 }
  0xab   : > { %p1053_p11 = scmp.lt.u32.totalorder %s1047_s5, %s143_s6 }
  0xac   : > { %p1052_p10 = por %p1051_p9, %p1050_p8 }
  0xae   : > { %p1054_p12 = por %p1053_p11, %p1052_p10 }
  0xb0   : > { %p1055_p13 = pnand %p1054_p12, %p1048_p7 }
  0xb2   : > { %1058 = shalt.err (!%p1055_p13)  }
  0xb3   : > { %s1059_s20 = scalar_lea.vmem %s1828_s2, 16  ;;  %p1064_p1 = scmp.lt.s32.totalorder %s1828_s2, %s1744_s7 }
  0xb4   : > { %p1060_p0 = scmp.ne.s32.totalorder %s1828_s2, %s1059_s20  ;;  %p1065_p2 = scmp.lt.s32.totalorder %s1803_s1, %s1059_s20 }
  0xb6   : > { %p1066_p4 = por %p1065_p2, %p1064_p1 }
  0xb8   : > { %p1067_p6 = pnand %p1066_p4, %p1060_p0 }
  0xba   : > { %1070 = shalt.err (!%p1067_p6)  }
  0xbb   : > { %156 = dma.hbm_to_vmem [thread:$0]  %s143_s6, 16, %s1828_s2, [#allocation5 + $0x11] }
  0xbc   : > { %s1618_s8 = smov [#allocation2 + $0x2]   ;;  %s1864_s17 = sld [smem:[#allocation8 + %s1834_s24]] }
  0xbd   : > { %s172_s30 = sshll.u32 %s1618_s8, 4  ;;  %s1619_s9 = smov [#allocation3 + $0x2]   ;;  %s173_s30 = int_to_ptr.vmem [resolvable:$true] %s172_s30 }
  0xbe   : > { %s187_s13 = sshll.u32 %s1619_s9, 4  ;;  %s1867_s14 = sld [smem:[#allocation9 + %s1834_s24]]  ;;  %s1870_s13 = int_to_ptr.vmem [resolvable:$true] %s187_s13 }
  0xbf   : > { %s789_s16 = sshll.u32 %s1848_s26, 4 }
  0xc0   : > { %s162_s5 = scalar_lea.hbm %s2208_s3, %s789_s16 }
  0xc1   : > { %s1071_s18 = scalar_lea.hbm %s162_s5, 16  ;;  %p1074_p8 = scmp.lt.u32.totalorder %s162_s5, %s2208_s3 }
  0xc2   : > { %p1072_p7 = scmp.ne.s32.totalorder %s162_s5, %s1071_s18  ;;  %p1075_p9 = scmp.lt.u32.totalorder %s1749_s15, %s1071_s18 }
  0xc3   : > { %p1077_p11 = scmp.lt.u32.totalorder %s1071_s18, %s162_s5 }
  0xc4   : > { %p1076_p10 = por %p1075_p9, %p1074_p8 }
  0xc6   : > { %p1078_p12 = por %p1077_p11, %p1076_p10 }
  0xc8   : > { %p1079_p13 = pnand %p1078_p12, %p1072_p7 }
  0xca   : > { %1082 = shalt.err (!%p1079_p13)  }
  0xcb   : > { %s1083_s24 = scalar_lea.vmem %s173_s30, 16  ;;  %p1088_p1 = scmp.lt.s32.totalorder %s173_s30, %s1734_s25 }
  0xcc   : > { %p1084_p0 = scmp.ne.s32.totalorder %s173_s30, %s1083_s24  ;;  %p1089_p2 = scmp.lt.s32.totalorder %s1758_s27, %s1083_s24 }
  0xce   : > { %p1090_p4 = por %p1089_p2, %p1088_p1 }
  0xd0   : > { %p1091_p6 = pnand %p1090_p4, %p1084_p0 }
  0xd2   : > { %1094 = shalt.err (!%p1091_p6)  }
  0xd3   : > { %175 = dma.hbm_to_vmem [thread:$0]  %s162_s5, 16, %s173_s30, [#allocation5 + $0x2] }
  0xd4   : > { %s790_s26 = sshll.u32 %s1864_s17, 4  ;;  %s1620_s6 = smov [#allocation4 + $0x2]  }
  0xd5   : > { %s202_s20 = sshll.u32 %s1620_s6, 4  ;;  %s177_s16 = scalar_lea.hbm %s2209_s4, %s790_s26  ;;  %s1885_s20 = int_to_ptr.vmem [resolvable:$true] %s202_s20 }
  0xd6   : > { %s1095_s0 = scalar_lea.hbm %s177_s16, 16  ;;  %p1098_p8 = scmp.lt.u32.totalorder %s177_s16, %s2209_s4 }
  0xd7   : > { %p1096_p7 = scmp.ne.s32.totalorder %s177_s16, %s1095_s0  ;;  %p1099_p9 = scmp.lt.u32.totalorder %s1775_s23, %s1095_s0 }
  0xd8   : > { %p1101_p11 = scmp.lt.u32.totalorder %s1095_s0, %s177_s16 }
  0xd9   : > { %p1100_p10 = por %p1099_p9, %p1098_p8 }
  0xdb   : > { %p1102_p12 = por %p1101_p11, %p1100_p10 }
  0xdd   : > { %p1103_p13 = pnand %p1102_p12, %p1096_p7 }
  0xdf   : > { %1106 = shalt.err (!%p1103_p13)  }
  0xe0   : > { %s1107_s30 = scalar_lea.vmem %s1870_s13, 16  ;;  %p1112_p1 = scmp.lt.s32.totalorder %s1870_s13, %s1739_s28 }
  0xe1   : > { %p1108_p0 = scmp.ne.s32.totalorder %s1870_s13, %s1107_s30  ;;  %p1113_p2 = scmp.lt.s32.totalorder %s1784_s29, %s1107_s30 }
  0xe3   : > { %p1114_p4 = por %p1113_p2, %p1112_p1 }
  0xe5   : > { %p1115_p6 = pnand %p1114_p4, %p1108_p0 }
  0xe7   : > { %1118 = shalt.err (!%p1115_p6)  }
  0xe8   : > { %190 = dma.hbm_to_vmem [thread:$0]  %s177_s16, 16, %s1870_s13, [#allocation5 + $0xa] }
  0xe9   : > { %s791_s17 = sshll.u32 %s1867_s14, 4  ;;  %s206_s5 = sadd.s32 3, %s1724_s21 }
  0xea   : > { %s192_s24 = scalar_lea.hbm %s2208_s3, %s791_s17  ;;  %s207_s26 = sld [smem:[#allocation7 + %s206_s5]] }
  0xeb   : > { %s1119_s6 = scalar_lea.hbm %s192_s24, 16  ;;  %p1122_p8 = scmp.lt.u32.totalorder %s192_s24, %s2208_s3 }
  0xec   : > { %p1120_p7 = scmp.ne.s32.totalorder %s192_s24, %s1119_s6  ;;  %p1123_p9 = scmp.lt.u32.totalorder %s1749_s15, %s1119_s6 }
  0xed   : > { %p1125_p11 = scmp.lt.u32.totalorder %s1119_s6, %s192_s24 }
  0xee   : > { %p1124_p10 = por %p1123_p9, %p1122_p8 }
  0xf0   : > { %p1126_p12 = por %p1125_p11, %p1124_p10 }
  0xf2   : > { %p1127_p13 = pnand %p1126_p12, %p1120_p7 }
  0xf4   : > { %1130 = shalt.err (!%p1127_p13)  }
  0xf5   : > { %s1131_s13 = scalar_lea.vmem %s1885_s20, 16  ;;  %p1136_p1 = scmp.lt.s32.totalorder %s1885_s20, %s1744_s7 }
  0xf6   : > { %p1132_p0 = scmp.ne.s32.totalorder %s1885_s20, %s1131_s13  ;;  %p1137_p2 = scmp.lt.s32.totalorder %s1803_s1, %s1131_s13 }
  0xf8   : > { %p1138_p4 = por %p1137_p2, %p1136_p1 }
  0xfa   : > { %p1139_p6 = pnand %p1138_p4, %p1132_p0 }
  0xfc   : > { %1142 = shalt.err (!%p1139_p6)  }
  0xfd   : > { %205 = dma.hbm_to_vmem [thread:$0]  %s192_s24, 16, %s1885_s20, [#allocation5 + $0x12] }
  0xfe   : > { %s1912_s14 = sld [smem:[#allocation8 + %s206_s5]]  ;;  %s1621_s16 = smov [#allocation2 + $0x3]  }
  0xff   : > { %s221_s0 = sshll.u32 %s1621_s16, 4  ;;  %s1622_s10 = smov [#allocation3 + $0x3]   ;;  %s222_s0 = int_to_ptr.vmem [resolvable:$true] %s221_s0 }
 0x100   : > { %s236_s18 = sshll.u32 %s1622_s10, 4  ;;  %s1916_s30 = sld [smem:[#allocation9 + %s206_s5]]  ;;  %s1914_s18 = int_to_ptr.vmem [resolvable:$true] %s236_s18 }
 0x101   : > { %s792_s17 = sshll.u32 %s207_s26, 4  ;;  %s1623_s8 = smov [#allocation4 + $0x3]  }
 0x102   : > { %s211_s6 = scalar_lea.hbm %s2208_s3, %s792_s17  ;;  %s251_s9 = sshll.u32 %s1623_s8, 4  ;;  %s1928_s9 = int_to_ptr.vmem [resolvable:$true] %s251_s9 }
 0x103   : > { %s1143_s20 = scalar_lea.hbm %s211_s6, 16  ;;  %p1146_p8 = scmp.lt.u32.totalorder %s211_s6, %s2208_s3 }
 0x104   : > { %p1144_p7 = scmp.ne.s32.totalorder %s211_s6, %s1143_s20  ;;  %p1147_p9 = scmp.lt.u32.totalorder %s1749_s15, %s1143_s20 }
 0x105   : > { %p1149_p11 = scmp.lt.u32.totalorder %s1143_s20, %s211_s6 }
 0x106   : > { %p1148_p10 = por %p1147_p9, %p1146_p8 }
 0x108   : > { %p1150_p12 = por %p1149_p11, %p1148_p10 }
 0x10a   : > { %p1151_p13 = pnand %p1150_p12, %p1144_p7 }
 0x10c   : > { %1154 = shalt.err (!%p1151_p13)  }
 0x10d   : > { %s1155_s5 = scalar_lea.vmem %s222_s0, 16  ;;  %p1160_p1 = scmp.lt.s32.totalorder %s222_s0, %s1734_s25 }
 0x10e   : > { %p1156_p0 = scmp.ne.s32.totalorder %s222_s0, %s1155_s5  ;;  %p1161_p2 = scmp.lt.s32.totalorder %s1758_s27, %s1155_s5 }
 0x110   : > { %p1162_p4 = por %p1161_p2, %p1160_p1 }
 0x112   : > { %p1163_p6 = pnand %p1162_p4, %p1156_p0 }
 0x114   : > { %1166 = shalt.err (!%p1163_p6)  }
 0x115   : > { %224 = dma.hbm_to_vmem [thread:$0]  %s211_s6, 16, %s222_s0, [#allocation5 + $0x3] }
 0x116   : > { %s793_s26 = sshll.u32 %s1912_s14, 4  ;;  %s1934_s19 = sadd.s32 4, %s1724_s21 }
 0x117   : > { %s226_s17 = scalar_lea.hbm %s2209_s4, %s793_s26 }
 0x118   : > { %s1167_s2 = scalar_lea.hbm %s226_s17, 16  ;;  %p1170_p8 = scmp.lt.u32.totalorder %s226_s17, %s2209_s4 }
 0x119   : > { %p1168_p7 = scmp.ne.s32.totalorder %s226_s17, %s1167_s2  ;;  %p1171_p9 = scmp.lt.u32.totalorder %s1775_s23, %s1167_s2 }
 0x11a   : > { %p1173_p11 = scmp.lt.u32.totalorder %s1167_s2, %s226_s17 }
 0x11b   : > { %p1172_p10 = por %p1171_p9, %p1170_p8 }
 0x11d   : > { %p1174_p12 = por %p1173_p11, %p1172_p10 }
 0x11f   : > { %p1175_p13 = pnand %p1174_p12, %p1168_p7 }
 0x121   : > { %1178 = shalt.err (!%p1175_p13)  }
 0x122   : > { %s1179_s14 = scalar_lea.vmem %s1914_s18, 16  ;;  %p1184_p1 = scmp.lt.s32.totalorder %s1914_s18, %s1739_s28 }
 0x123   : > { %p1180_p0 = scmp.ne.s32.totalorder %s1914_s18, %s1179_s14  ;;  %p1185_p2 = scmp.lt.s32.totalorder %s1784_s29, %s1179_s14 }
 0x125   : > { %p1186_p4 = por %p1185_p2, %p1184_p1 }
 0x127   : > { %p1187_p6 = pnand %p1186_p4, %p1180_p0 }
 0x129   : > { %1190 = shalt.err (!%p1187_p6)  }
 0x12a   : > { %239 = dma.hbm_to_vmem [thread:$0]  %s226_s17, 16, %s1914_s18, [#allocation5 + $0xb] }
 0x12b   : > { %s794_s0 = sshll.u32 %s1916_s30, 4  ;;  %s1948_s6 = sld [smem:[#allocation7 + %s1934_s19]] }
 0x12c   : > { %s241_s5 = scalar_lea.hbm %s2208_s3, %s794_s0 }
 0x12d   : > { %s1191_s26 = scalar_lea.hbm %s241_s5, 16  ;;  %p1194_p8 = scmp.lt.u32.totalorder %s241_s5, %s2208_s3 }
 0x12e   : > { %p1192_p7 = scmp.ne.s32.totalorder %s241_s5, %s1191_s26  ;;  %p1195_p9 = scmp.lt.u32.totalorder %s1749_s15, %s1191_s26 }
 0x12f   : > { %p1197_p11 = scmp.lt.u32.totalorder %s1191_s26, %s241_s5 }
 0x130   : > { %p1196_p10 = por %p1195_p9, %p1194_p8 }
 0x132   : > { %p1198_p12 = por %p1197_p11, %p1196_p10 }
 0x134   : > { %p1199_p13 = pnand %p1198_p12, %p1192_p7 }
 0x136   : > { %1202 = shalt.err (!%p1199_p13)  }
 0x137   : > { %s1203_s18 = scalar_lea.vmem %s1928_s9, 16  ;;  %p1208_p1 = scmp.lt.s32.totalorder %s1928_s9, %s1744_s7 }
 0x138   : > { %p1204_p0 = scmp.ne.s32.totalorder %s1928_s9, %s1203_s18  ;;  %p1209_p2 = scmp.lt.s32.totalorder %s1803_s1, %s1203_s18 }
 0x13a   : > { %p1210_p4 = por %p1209_p2, %p1208_p1 }
 0x13c   : > { %p1211_p6 = pnand %p1210_p4, %p1204_p0 }
 0x13e   : > { %1214 = shalt.err (!%p1211_p6)  }
 0x13f   : > { %254 = dma.hbm_to_vmem [thread:$0]  %s241_s5, 16, %s1928_s9, [#allocation5 + $0x13] }
 0x140   : > { %s1624_s30 = smov [#allocation2 + $0x4]   ;;  %s1964_s2 = sld [smem:[#allocation8 + %s1934_s19]] }
 0x141   : > { %s270_s17 = sshll.u32 %s1624_s30, 4  ;;  %s1625_s8 = smov [#allocation3 + $0x4]   ;;  %s271_s17 = int_to_ptr.vmem [resolvable:$true] %s270_s17 }
 0x142   : > { %s285_s20 = sshll.u32 %s1625_s8, 4  ;;  %s1967_s14 = sld [smem:[#allocation9 + %s1934_s19]]  ;;  %s1970_s20 = int_to_ptr.vmem [resolvable:$true] %s285_s20 }
 0x143   : > { %s795_s0 = sshll.u32 %s1948_s6, 4 }
 0x144   : > { %s260_s26 = scalar_lea.hbm %s2208_s3, %s795_s0 }
 0x145   : > { %s1215_s16 = scalar_lea.hbm %s260_s26, 16  ;;  %p1218_p8 = scmp.lt.u32.totalorder %s260_s26, %s2208_s3 }
 0x146   : > { %p1216_p7 = scmp.ne.s32.totalorder %s260_s26, %s1215_s16  ;;  %p1219_p9 = scmp.lt.u32.totalorder %s1749_s15, %s1215_s16 }
 0x147   : > { %p1221_p11 = scmp.lt.u32.totalorder %s1215_s16, %s260_s26 }
 0x148   : > { %p1220_p10 = por %p1219_p9, %p1218_p8 }
 0x14a   : > { %p1222_p12 = por %p1221_p11, %p1220_p10 }
 0x14c   : > { %p1223_p13 = pnand %p1222_p12, %p1216_p7 }
 0x14e   : > { %1226 = shalt.err (!%p1223_p13)  }
 0x14f   : > { %s1227_s19 = scalar_lea.vmem %s271_s17, 16  ;;  %p1232_p1 = scmp.lt.s32.totalorder %s271_s17, %s1734_s25 }
 0x150   : > { %p1228_p0 = scmp.ne.s32.totalorder %s271_s17, %s1227_s19  ;;  %p1233_p2 = scmp.lt.s32.totalorder %s1758_s27, %s1227_s19 }
 0x152   : > { %p1234_p4 = por %p1233_p2, %p1232_p1 }
 0x154   : > { %p1235_p6 = pnand %p1234_p4, %p1228_p0 }
 0x156   : > { %1238 = shalt.err (!%p1235_p6)  }
 0x157   : > { %273 = dma.hbm_to_vmem [thread:$0]  %s260_s26, 16, %s271_s17, [#allocation5 + $0x4] }
 0x158   : > { %s796_s6 = sshll.u32 %s1964_s2, 4  ;;  %s1626_s5 = smov [#allocation4 + $0x4]  }
 0x159   : > { %s300_s18 = sshll.u32 %s1626_s5, 4  ;;  %s275_s0 = scalar_lea.hbm %s2209_s4, %s796_s6  ;;  %s1985_s18 = int_to_ptr.vmem [resolvable:$true] %s300_s18 }
 0x15a   : > { %s1239_s24 = scalar_lea.hbm %s275_s0, 16  ;;  %p1242_p8 = scmp.lt.u32.totalorder %s275_s0, %s2209_s4 }
 0x15b   : > { %p1240_p7 = scmp.ne.s32.totalorder %s275_s0, %s1239_s24  ;;  %p1243_p9 = scmp.lt.u32.totalorder %s1775_s23, %s1239_s24 }
 0x15c   : > { %p1245_p11 = scmp.lt.u32.totalorder %s1239_s24, %s275_s0 }
 0x15d   : > { %p1244_p10 = por %p1243_p9, %p1242_p8 }
 0x15f   : > { %p1246_p12 = por %p1245_p11, %p1244_p10 }
 0x161   : > { %p1247_p13 = pnand %p1246_p12, %p1240_p7 }
 0x163   : > { %1250 = shalt.err (!%p1247_p13)  }
 0x164   : > { %s1251_s17 = scalar_lea.vmem %s1970_s20, 16  ;;  %p1256_p1 = scmp.lt.s32.totalorder %s1970_s20, %s1739_s28 }
 0x165   : > { %p1252_p0 = scmp.ne.s32.totalorder %s1970_s20, %s1251_s17  ;;  %p1257_p2 = scmp.lt.s32.totalorder %s1784_s29, %s1251_s17 }
 0x167   : > { %p1258_p4 = por %p1257_p2, %p1256_p1 }
 0x169   : > { %p1259_p6 = pnand %p1258_p4, %p1252_p0 }
 0x16b   : > { %1262 = shalt.err (!%p1259_p6)  }
 0x16c   : > { %288 = dma.hbm_to_vmem [thread:$0]  %s275_s0, 16, %s1970_s20, [#allocation5 + $0xc] }
 0x16d   : > { %s797_s2 = sshll.u32 %s1967_s14, 4  ;;  %s304_s26 = sadd.s32 5, %s1724_s21 }
 0x16e   : > { %s290_s19 = scalar_lea.hbm %s2208_s3, %s797_s2  ;;  %s305_s6 = sld [smem:[#allocation7 + %s304_s26]] }
 0x16f   : > { %s1263_s5 = scalar_lea.hbm %s290_s19, 16  ;;  %p1266_p8 = scmp.lt.u32.totalorder %s290_s19, %s2208_s3 }
 0x170   : > { %p1264_p7 = scmp.ne.s32.totalorder %s290_s19, %s1263_s5  ;;  %p1267_p9 = scmp.lt.u32.totalorder %s1749_s15, %s1263_s5 }
 0x171   : > { %p1269_p11 = scmp.lt.u32.totalorder %s1263_s5, %s290_s19 }
 0x172   : > { %p1268_p10 = por %p1267_p9, %p1266_p8 }
 0x174   : > { %p1270_p12 = por %p1269_p11, %p1268_p10 }
 0x176   : > { %p1271_p13 = pnand %p1270_p12, %p1264_p7 }
 0x178   : > { %1274 = shalt.err (!%p1271_p13)  }
 0x179   : > { %s1275_s20 = scalar_lea.vmem %s1985_s18, 16  ;;  %p1280_p1 = scmp.lt.s32.totalorder %s1985_s18, %s1744_s7 }
 0x17a   : > { %p1276_p0 = scmp.ne.s32.totalorder %s1985_s18, %s1275_s20  ;;  %p1281_p2 = scmp.lt.s32.totalorder %s1803_s1, %s1275_s20 }
 0x17c   : > { %p1282_p4 = por %p1281_p2, %p1280_p1 }
 0x17e   : > { %p1283_p6 = pnand %p1282_p4, %p1276_p0 }
 0x180   : > { %1286 = shalt.err (!%p1283_p6)  }
 0x181   : > { %303 = dma.hbm_to_vmem [thread:$0]  %s290_s19, 16, %s1985_s18, [#allocation5 + $0x14] }
 0x182   : > { %s2012_s14 = sld [smem:[#allocation8 + %s304_s26]]  ;;  %s1627_s0 = smov [#allocation2 + $0x5]  }
 0x183   : > { %s319_s24 = sshll.u32 %s1627_s0, 4  ;;  %s1628_s13 = smov [#allocation3 + $0x5]   ;;  %s320_s24 = int_to_ptr.vmem [resolvable:$true] %s319_s24 }
 0x184   : > { %s334_s16 = sshll.u32 %s1628_s13, 4  ;;  %s2016_s17 = sld [smem:[#allocation9 + %s304_s26]]  ;;  %s2014_s16 = int_to_ptr.vmem [resolvable:$true] %s334_s16 }
 0x185   : > { %s798_s2 = sshll.u32 %s305_s6, 4  ;;  %s1629_s30 = smov [#allocation4 + $0x5]  }
 0x186   : > { %s309_s5 = scalar_lea.hbm %s2208_s3, %s798_s2  ;;  %s349_s8 = sshll.u32 %s1629_s30, 4  ;;  %s2028_s8 = int_to_ptr.vmem [resolvable:$true] %s349_s8 }
 0x187   : > { %s1287_s18 = scalar_lea.hbm %s309_s5, 16  ;;  %p1290_p8 = scmp.lt.u32.totalorder %s309_s5, %s2208_s3 }
 0x188   : > { %p1288_p7 = scmp.ne.s32.totalorder %s309_s5, %s1287_s18  ;;  %p1291_p9 = scmp.lt.u32.totalorder %s1749_s15, %s1287_s18 }
 0x189   : > { %p1293_p11 = scmp.lt.u32.totalorder %s1287_s18, %s309_s5 }
 0x18a   : > { %p1292_p10 = por %p1291_p9, %p1290_p8 }
 0x18c   : > { %p1294_p12 = por %p1293_p11, %p1292_p10 }
 0x18e   : > { %p1295_p13 = pnand %p1294_p12, %p1288_p7 }
 0x190   : > { %1298 = shalt.err (!%p1295_p13)  }
 0x191   : > { %s1299_s26 = scalar_lea.vmem %s320_s24, 16  ;;  %p1304_p1 = scmp.lt.s32.totalorder %s320_s24, %s1734_s25 }
 0x192   : > { %p1300_p0 = scmp.ne.s32.totalorder %s320_s24, %s1299_s26  ;;  %p1305_p2 = scmp.lt.s32.totalorder %s1758_s27, %s1299_s26 }
 0x194   : > { %p1306_p4 = por %p1305_p2, %p1304_p1 }
 0x196   : > { %p1307_p6 = pnand %p1306_p4, %p1300_p0 }
 0x198   : > { %1310 = shalt.err (!%p1307_p6)  }
 0x199   : > { %322 = dma.hbm_to_vmem [thread:$0]  %s309_s5, 16, %s320_s24, [#allocation5 + $0x5] }
 0x19a   : > { %s799_s6 = sshll.u32 %s2012_s14, 4  ;;  %s2034_s10 = sadd.s32 6, %s1724_s21 }
 0x19b   : > { %s324_s2 = scalar_lea.hbm %s2209_s4, %s799_s6 }
 0x19c   : > { %s1311_s9 = scalar_lea.hbm %s324_s2, 16  ;;  %p1314_p8 = scmp.lt.u32.totalorder %s324_s2, %s2209_s4 }
 0x19d   : > { %p1312_p7 = scmp.ne.s32.totalorder %s324_s2, %s1311_s9  ;;  %p1315_p9 = scmp.lt.u32.totalorder %s1775_s23, %s1311_s9 }
 0x19e   : > { %p1317_p11 = scmp.lt.u32.totalorder %s1311_s9, %s324_s2 }
 0x19f   : > { %p1316_p10 = por %p1315_p9, %p1314_p8 }
 0x1a1   : > { %p1318_p12 = por %p1317_p11, %p1316_p10 }
 0x1a3   : > { %p1319_p13 = pnand %p1318_p12, %p1312_p7 }
 0x1a5   : > { %1322 = shalt.err (!%p1319_p13)  }
 0x1a6   : > { %s1323_s14 = scalar_lea.vmem %s2014_s16, 16  ;;  %p1328_p1 = scmp.lt.s32.totalorder %s2014_s16, %s1739_s28 }
 0x1a7   : > { %p1324_p0 = scmp.ne.s32.totalorder %s2014_s16, %s1323_s14  ;;  %p1329_p2 = scmp.lt.s32.totalorder %s1784_s29, %s1323_s14 }
 0x1a9   : > { %p1330_p4 = por %p1329_p2, %p1328_p1 }
 0x1ab   : > { %p1331_p6 = pnand %p1330_p4, %p1324_p0 }
 0x1ad   : > { %1334 = shalt.err (!%p1331_p6)  }
 0x1ae   : > { %337 = dma.hbm_to_vmem [thread:$0]  %s324_s2, 16, %s2014_s16, [#allocation5 + $0xd] }
 0x1af   : > { %s800_s24 = sshll.u32 %s2016_s17, 4  ;;  %s2048_s5 = sld [smem:[#allocation7 + %s2034_s10]] }
 0x1b0   : > { %s339_s26 = scalar_lea.hbm %s2208_s3, %s800_s24 }
 0x1b1   : > { %s1335_s6 = scalar_lea.hbm %s339_s26, 16  ;;  %p1338_p8 = scmp.lt.u32.totalorder %s339_s26, %s2208_s3 }
 0x1b2   : > { %p1336_p7 = scmp.ne.s32.totalorder %s339_s26, %s1335_s6  ;;  %p1339_p9 = scmp.lt.u32.totalorder %s1749_s15, %s1335_s6 }
 0x1b3   : > { %p1341_p11 = scmp.lt.u32.totalorder %s1335_s6, %s339_s26 }
 0x1b4   : > { %p1340_p10 = por %p1339_p9, %p1338_p8 }
 0x1b6   : > { %p1342_p12 = por %p1341_p11, %p1340_p10 }
 0x1b8   : > { %p1343_p13 = pnand %p1342_p12, %p1336_p7 }
 0x1ba   : > { %1346 = shalt.err (!%p1343_p13)  }
 0x1bb   : > { %s1347_s16 = scalar_lea.vmem %s2028_s8, 16  ;;  %p1352_p1 = scmp.lt.s32.totalorder %s2028_s8, %s1744_s7 }
 0x1bc   : > { %p1348_p0 = scmp.ne.s32.totalorder %s2028_s8, %s1347_s16  ;;  %p1353_p2 = scmp.lt.s32.totalorder %s1803_s1, %s1347_s16 }
 0x1be   : > { %p1354_p4 = por %p1353_p2, %p1352_p1 }
 0x1c0   : > { %p1355_p6 = pnand %p1354_p4, %p1348_p0 }
 0x1c2   : > { %1358 = shalt.err (!%p1355_p6)  }
 0x1c3   : > { %352 = dma.hbm_to_vmem [thread:$0]  %s339_s26, 16, %s2028_s8, [#allocation5 + $0x15] }
 0x1c4   : > { %s1630_s17 = smov [#allocation2 + $0x6]   ;;  %s2064_s9 = sld [smem:[#allocation8 + %s2034_s10]] }
 0x1c5   : > { %s368_s2 = sshll.u32 %s1630_s17, 4  ;;  %s1631_s30 = smov [#allocation3 + $0x6]   ;;  %s369_s2 = int_to_ptr.vmem [resolvable:$true] %s368_s2 }
 0x1c6   : > { %s383_s18 = sshll.u32 %s1631_s30, 4  ;;  %s2067_s14 = sld [smem:[#allocation9 + %s2034_s10]]  ;;  %s2070_s18 = int_to_ptr.vmem [resolvable:$true] %s383_s18 }
 0x1c7   : > { %s801_s24 = sshll.u32 %s2048_s5, 4 }
 0x1c8   : > { %s358_s6 = scalar_lea.hbm %s2208_s3, %s801_s24 }
 0x1c9   : > { %s1359_s0 = scalar_lea.hbm %s358_s6, 16  ;;  %p1362_p8 = scmp.lt.u32.totalorder %s358_s6, %s2208_s3 }
 0x1ca   : > { %p1360_p7 = scmp.ne.s32.totalorder %s358_s6, %s1359_s0  ;;  %p1363_p9 = scmp.lt.u32.totalorder %s1749_s15, %s1359_s0 }
 0x1cb   : > { %p1365_p11 = scmp.lt.u32.totalorder %s1359_s0, %s358_s6 }
 0x1cc   : > { %p1364_p10 = por %p1363_p9, %p1362_p8 }
 0x1ce   : > { %p1366_p12 = por %p1365_p11, %p1364_p10 }
 0x1d0   : > { %p1367_p13 = pnand %p1366_p12, %p1360_p7 }
 0x1d2   : > { %1370 = shalt.err (!%p1367_p13)  }
 0x1d3   : > { %s1371_s10 = scalar_lea.vmem %s369_s2, 16  ;;  %p1376_p1 = scmp.lt.s32.totalorder %s369_s2, %s1734_s25 }
 0x1d4   : > { %p1372_p0 = scmp.ne.s32.totalorder %s369_s2, %s1371_s10  ;;  %p1377_p2 = scmp.lt.s32.totalorder %s1758_s27, %s1371_s10 }
 0x1d6   : > { %p1378_p4 = por %p1377_p2, %p1376_p1 }
 0x1d8   : > { %p1379_p6 = pnand %p1378_p4, %p1372_p0 }
 0x1da   : > { %1382 = shalt.err (!%p1379_p6)  }
 0x1db   : > { %371 = dma.hbm_to_vmem [thread:$0]  %s358_s6, 16, %s369_s2, [#allocation5 + $0x6] }
 0x1dc   : > { %s802_s5 = sshll.u32 %s2064_s9, 4  ;;  %s1632_s26 = smov [#allocation4 + $0x6]  }
 0x1dd   : > { %s398_s16 = sshll.u32 %s1632_s26, 4  ;;  %s373_s24 = scalar_lea.hbm %s2209_s4, %s802_s5  ;;  %s2085_s16 = int_to_ptr.vmem [resolvable:$true] %s398_s16 }
 0x1de   : > { %s1383_s19 = scalar_lea.hbm %s373_s24, 16  ;;  %p1386_p8 = scmp.lt.u32.totalorder %s373_s24, %s2209_s4 }
 0x1df   : > { %p1384_p7 = scmp.ne.s32.totalorder %s373_s24, %s1383_s19  ;;  %p1387_p9 = scmp.lt.u32.totalorder %s1775_s23, %s1383_s19 }
 0x1e0   : > { %p1389_p11 = scmp.lt.u32.totalorder %s1383_s19, %s373_s24 }
 0x1e1   : > { %p1388_p10 = por %p1387_p9, %p1386_p8 }
 0x1e3   : > { %p1390_p12 = por %p1389_p11, %p1388_p10 }
 0x1e5   : > { %p1391_p13 = pnand %p1390_p12, %p1384_p7 }
 0x1e7   : > { %1394 = shalt.err (!%p1391_p13)  }
 0x1e8   : > { %s1395_s2 = scalar_lea.vmem %s2070_s18, 16  ;;  %p1400_p1 = scmp.lt.s32.totalorder %s2070_s18, %s1739_s28 }
 0x1e9   : > { %p1396_p0 = scmp.ne.s32.totalorder %s2070_s18, %s1395_s2  ;;  %p1401_p2 = scmp.lt.s32.totalorder %s1784_s29, %s1395_s2 }
 0x1eb   : > { %p1402_p4 = por %p1401_p2, %p1400_p1 }
 0x1ed   : > { %p1403_p6 = pnand %p1402_p4, %p1396_p0 }
 0x1ef   : > { %1406 = shalt.err (!%p1403_p6)  }
 0x1f0   : > { %386 = dma.hbm_to_vmem [thread:$0]  %s373_s24, 16, %s2070_s18, [#allocation5 + $0xe] }
 0x1f1   : > { %s803_s9 = sshll.u32 %s2067_s14, 4  ;;  %s402_s6 = sadd.s32 7, %s1724_s21 }
 0x1f2   : > { %s388_s10 = scalar_lea.hbm %s2208_s3, %s803_s9  ;;  %s403_s5 = sld [smem:[#allocation7 + %s402_s6]] }
 0x1f3   : > { %s1407_s26 = scalar_lea.hbm %s388_s10, 16  ;;  %p1410_p8 = scmp.lt.u32.totalorder %s388_s10, %s2208_s3 }
 0x1f4   : > { %p1408_p7 = scmp.ne.s32.totalorder %s388_s10, %s1407_s26  ;;  %p1411_p9 = scmp.lt.u32.totalorder %s1749_s15, %s1407_s26 }
 0x1f5   : > { %p1413_p11 = scmp.lt.u32.totalorder %s1407_s26, %s388_s10 }
 0x1f6   : > { %p1412_p10 = por %p1411_p9, %p1410_p8 }
 0x1f8   : > { %p1414_p12 = por %p1413_p11, %p1412_p10 }
 0x1fa   : > { %p1415_p13 = pnand %p1414_p12, %p1408_p7 }
 0x1fc   : > { %1418 = shalt.err (!%p1415_p13)  }
 0x1fd   : > { %s1419_s21 = scalar_lea.vmem %s2085_s16, 16  ;;  %p1424_p1 = scmp.lt.s32.totalorder %s2085_s16, %s1744_s7 }
 0x1fe   : > { %p1420_p0 = scmp.ne.s32.totalorder %s2085_s16, %s1419_s21  ;;  %p1425_p2 = scmp.lt.s32.totalorder %s1803_s1, %s1419_s21 }
 0x200   : > { %p1426_p4 = por %p1425_p2, %p1424_p1 }
 0x202   : > { %p1427_p6 = pnand %p1426_p4, %p1420_p0 }
 0x204   : > { %1430 = shalt.err (!%p1427_p6)  }
 0x205   : > { %401 = dma.hbm_to_vmem [thread:$0]  %s388_s10, 16, %s2085_s16, [#allocation5 + $0x16] }
 0x206   : > { %s2112_s18 = sld [smem:[#allocation8 + %s402_s6]]  ;;  %s1633_s14 = smov [#allocation2 + $0x7]  }
 0x207   : > { %s417_s24 = sshll.u32 %s1633_s14, 4  ;;  %s1634_s19 = smov [#allocation3 + $0x7]   ;;  %s418_s24 = int_to_ptr.vmem [resolvable:$true] %s417_s24 }
 0x208   : > { %s432_s20 = sshll.u32 %s1634_s19, 4  ;;  %s2116_s0 = sld [smem:[#allocation9 + %s402_s6]]  ;;  %s2114_s20 = int_to_ptr.vmem [resolvable:$true] %s432_s20 }
 0x209   : > { %s804_s2 = sshll.u32 %s403_s5, 4  ;;  %s1635_s26 = smov [#allocation4 + $0x7]  }
 0x20a   : > { %s407_s8 = scalar_lea.hbm %s2208_s3, %s804_s2  ;;  %s447_s17 = sshll.u32 %s1635_s26, 4  ;;  %s2131_s17 = int_to_ptr.vmem [resolvable:$true] %s447_s17 }
 0x20b   : > { %s1431_s16 = scalar_lea.hbm %s407_s8, 16  ;;  %p1434_p8 = scmp.lt.u32.totalorder %s407_s8, %s2208_s3 }
 0x20c   : > { %p1432_p7 = scmp.ne.s32.totalorder %s407_s8, %s1431_s16  ;;  %p1435_p9 = scmp.lt.u32.totalorder %s1749_s15, %s1431_s16 }
 0x20d   : > { %p1437_p11 = scmp.lt.u32.totalorder %s1431_s16, %s407_s8 }
 0x20e   : > { %p1436_p10 = por %p1435_p9, %p1434_p8 }
 0x210   : > { %p1438_p12 = por %p1437_p11, %p1436_p10 }
 0x212   : > { %p1439_p13 = pnand %p1438_p12, %p1432_p7 }
 0x214   : > { %1442 = shalt.err (!%p1439_p13)  }
 0x215   : > { %s1443_s6 = scalar_lea.vmem %s418_s24, 16  ;;  %p1448_p1 = scmp.lt.s32.totalorder %s418_s24, %s1734_s25 }
 0x216   : > { %p1444_p0 = scmp.ne.s32.totalorder %s418_s24, %s1443_s6  ;;  %p1449_p2 = scmp.lt.s32.totalorder %s1758_s27, %s1443_s6 }
 0x218   : > { %p1450_p4 = por %p1449_p2, %p1448_p1 }
 0x21a   : > { %p1451_p6 = pnand %p1450_p4, %p1444_p0 }
 0x21c   : > { %1454 = shalt.err (!%p1451_p6)  }
 0x21d   : > { %420 = dma.hbm_to_vmem [thread:$0]  %s407_s8, 16, %s418_s24, [#allocation5 + $0x7] }
 0x21e   : > { %s805_s5 = sshll.u32 %s2112_s18, 4 }
 0x21f   : > { %s422_s19 = scalar_lea.hbm %s2209_s4, %s805_s5 }
 0x220   : > { %s1455_s2 = scalar_lea.hbm %s422_s19, 16  ;;  %p1458_p8 = scmp.lt.u32.totalorder %s422_s19, %s2209_s4 }
 0x221   : > { %p1456_p7 = scmp.ne.s32.totalorder %s422_s19, %s1455_s2  ;;  %p1459_p9 = scmp.lt.u32.totalorder %s1775_s23, %s1455_s2 }
 0x222   : > { %p1461_p11 = scmp.lt.u32.totalorder %s1455_s2, %s422_s19 }
 0x223   : > { %p1460_p10 = por %p1459_p9, %p1458_p8 }
 0x225   : > { %p1462_p12 = por %p1461_p11, %p1460_p10 }
 0x227   : > { %p1463_p13 = pnand %p1462_p12, %p1456_p7 }
 0x229   : > { %1466 = shalt.err (!%p1463_p13)  }
 0x22a   : > { %s1467_s25 = scalar_lea.vmem %s2114_s20, 16  ;;  %p1472_p1 = scmp.lt.s32.totalorder %s2114_s20, %s1739_s28 }
 0x22b   : > { %p1468_p0 = scmp.ne.s32.totalorder %s2114_s20, %s1467_s25  ;;  %p1473_p2 = scmp.lt.s32.totalorder %s1784_s29, %s1467_s25 }
 0x22d   : > { %p1474_p4 = por %p1473_p2, %p1472_p1 }
 0x22f   : > { %p1475_p6 = pnand %p1474_p4, %p1468_p0 }
 0x231   : > { %1478 = shalt.err (!%p1475_p6)  }
 0x232   : > { %435 = dma.hbm_to_vmem [thread:$0]  %s422_s19, 16, %s2114_s20, [#allocation5 + $0xf] }
 0x233   : > { %s806_s27 = sshll.u32 %s2116_s0, 4 }
 0x234   : > { %s437_s24 = scalar_lea.hbm %s2208_s3, %s806_s27 }
 0x235   : > { %s1479_s8 = scalar_lea.hbm %s437_s24, 16  ;;  %p1482_p8 = scmp.lt.u32.totalorder %s437_s24, %s2208_s3 }
 0x236   : > { %p1480_p7 = scmp.ne.s32.totalorder %s437_s24, %s1479_s8  ;;  %p1483_p9 = scmp.lt.u32.totalorder %s1749_s15, %s1479_s8 }
 0x237   : > { %p1485_p11 = scmp.lt.u32.totalorder %s1479_s8, %s437_s24 }
 0x238   : > { %p1484_p10 = por %p1483_p9, %p1482_p8 }
 0x23a   : > { %p1486_p12 = por %p1485_p11, %p1484_p10 }
 0x23c   : > { %p1487_p13 = pnand %p1486_p12, %p1480_p7 }
 0x23e   : > { %1490 = shalt.err (!%p1487_p13)  }
 0x23f   : > { %s1491_s28 = scalar_lea.vmem %s2131_s17, 16  ;;  %p1496_p1 = scmp.lt.s32.totalorder %s2131_s17, %s1744_s7 }
 0x240   : > { %p1492_p0 = scmp.ne.s32.totalorder %s2131_s17, %s1491_s28  ;;  %p1497_p2 = scmp.lt.s32.totalorder %s1803_s1, %s1491_s28 }
 0x242   : > { %p1498_p4 = por %p1497_p2, %p1496_p1 }
 0x244   : > { %p1499_p6 = pnand %p1498_p4, %p1492_p0 }
 0x246   : > { %1502 = shalt.err (!%p1499_p6)  }
 0x247   : > { %450 = dma.hbm_to_vmem [thread:$0]  %s437_s24, 16, %s2131_s17, [#allocation5 + $0x17] }
 0x248   : > { %s62_s15 = scalar_lea.vmem [#allocation10], %s1728_s22 }
 0x249   : > { %1545 = dma.done.wait [#allocation5], 16 }
 0x24a   : > { %1546 = vsyncadd [#allocation5], 4294967280 }
 0x24b   : > { %1547 = dma.done.wait [#allocation5 + $0x8], 16 }
 0x24c   : > { %1548 = vsyncadd [#allocation5 + $0x8], 4294967280 }
 0x24d   : > { %1549 = dma.done.wait [#allocation5 + $0x10], 16 }
 0x24e   : > { %1550 = vsyncadd [#allocation5 + $0x10], 4294967280 }
 0x24f   : > { %1551 = dma.done.wait [#allocation5 + $0x1], 16 }
 0x250   : > { %1552 = vsyncadd [#allocation5 + $0x1], 4294967280 }
 0x251   : > { %1553 = dma.done.wait [#allocation5 + $0x9], 16 }
 0x252   : > { %1554 = vsyncadd [#allocation5 + $0x9], 4294967280 }
 0x253   : > { %1555 = dma.done.wait [#allocation5 + $0x11], 16 }
 0x254   : > { %1556 = vsyncadd [#allocation5 + $0x11], 4294967280 }
 0x255   : > { %1557 = dma.done.wait [#allocation5 + $0x2], 16 }
 0x256   : > { %1558 = vsyncadd [#allocation5 + $0x2], 4294967280 }
 0x257   : > { %1559 = dma.done.wait [#allocation5 + $0xa], 16 }
 0x258   : > { %1560 = vsyncadd [#allocation5 + $0xa], 4294967280 }
 0x259   : > { %1561 = dma.done.wait [#allocation5 + $0x12], 16 }
 0x25a   : > { %1562 = vsyncadd [#allocation5 + $0x12], 4294967280 }
 0x25b   : > { %1563 = dma.done.wait [#allocation5 + $0x3], 16 }
 0x25c   : > { %1564 = vsyncadd [#allocation5 + $0x3], 4294967280 }
 0x25d   : > { %1565 = dma.done.wait [#allocation5 + $0xb], 16 }
 0x25e   : > { %1566 = vsyncadd [#allocation5 + $0xb], 4294967280 }
 0x25f   : > { %1567 = dma.done.wait [#allocation5 + $0x13], 16 }
 0x260   : > { %1568 = vsyncadd [#allocation5 + $0x13], 4294967280 }
 0x261   : > { %1569 = dma.done.wait [#allocation5 + $0x4], 16 }
 0x262   : > { %1570 = vsyncadd [#allocation5 + $0x4], 4294967280 }
 0x263   : > { %1571 = dma.done.wait [#allocation5 + $0xc], 16 }
 0x264   : > { %1572 = vsyncadd [#allocation5 + $0xc], 4294967280 }
 0x265   : > { %1573 = dma.done.wait [#allocation5 + $0x14], 16 }
 0x266   : > { %1574 = vsyncadd [#allocation5 + $0x14], 4294967280 }
 0x267   : > { %1575 = dma.done.wait [#allocation5 + $0x5], 16 }
 0x268   : > { %1576 = vsyncadd [#allocation5 + $0x5], 4294967280 }
 0x269   : > { %1577 = dma.done.wait [#allocation5 + $0xd], 16 }
 0x26a   : > { %1578 = vsyncadd [#allocation5 + $0xd], 4294967280 }
 0x26b   : > { %1579 = dma.done.wait [#allocation5 + $0x15], 16 }
 0x26c   : > { %1580 = vsyncadd [#allocation5 + $0x15], 4294967280 }
 0x26d   : > { %1581 = dma.done.wait [#allocation5 + $0x6], 16 }
 0x26e   : > { %1582 = vsyncadd [#allocation5 + $0x6], 4294967280 }
 0x26f   : > { %1583 = dma.done.wait [#allocation5 + $0xe], 16 }
 0x270   : > { %1584 = vsyncadd [#allocation5 + $0xe], 4294967280 }
 0x271   : > { %1585 = dma.done.wait [#allocation5 + $0x16], 16 }
 0x272   : > { %1586 = vsyncadd [#allocation5 + $0x16], 4294967280 }
 0x273   : > { %1587 = dma.done.wait [#allocation5 + $0x7], 16 }
 0x274   : > { %1588 = vsyncadd [#allocation5 + $0x7], 4294967280 }
 0x275   : > { %1589 = dma.done.wait [#allocation5 + $0xf], 16 }
 0x276   : > { %1590 = vsyncadd [#allocation5 + $0xf], 4294967280 }
 0x277   : > { %1591 = dma.done.wait [#allocation5 + $0x17], 16 }
 0x278   : > { %1592 = vsyncadd [#allocation5 + $0x17], 4294967280  ;;  %v500_v0 = vld [vmem:[#allocation2] sm:$0xff]  ;;  %v501_v1 = vld [vmem:[#allocation3] sm:$0xff]  ;;  %s808_s29 = sshll.u32 %s1607_s12, 7  ;;  %s520_s1 = sshll.u32 %s62_s15, 4  ;;  %s2166_s1 = int_to_ptr.vmem [resolvable:$true] %s520_s1 }
 0x279   : > { %v503_v2 = vld [vmem:[#allocation4] sm:$0xff]  ;;  %v502_v3 = vadd.f32 %v501_v1, %v500_v0  ;;  %s2230_s17 = sld [smem:[#allocation93_spill]]  ;;  %s2231_s30 = sand.u32 1, %s1603_s11  }
 0x27a   : > { %s507_s6 = scalar_lea.sflag [#allocation11], %s2231_s30  ;;  %s1503_s5 = scalar_lea.vmem %s2166_s1, 128 }
 0x27b   : > { %v504_v4 = vsub.f32 %v502_v3, %v503_v2  ;;  %p1504_p7 = scmp.ne.s32.totalorder %s2166_s1, %s1503_s5  ;;  %s1636_s21 = smov [#allocation10]  }
 0x27c   : > { %s1507_s14 = sshll.u32 %s1636_s21, 4  ;;  %s1508_s14 = int_to_ptr.vmem [resolvable:$false] %s1507_s14 }
 0x27d   : > { %505 = vst [vmem:[%s62_s15] sm:$0xff] %v504_v4  ;;  %p1505_p8 = pnand %p1504_p7, %p1713_p3  ;;  %s1509_s19 = scalar_lea.vmem %s1508_s14, 256 }
 0x27e   : > { %p1510_p10 = scmp.lt.s32.totalorder %s2166_s1, %s1508_s14  ;;  %p1511_p11 = scmp.lt.s32.totalorder %s1509_s19, %s1503_s5 }
 0x27f   : > { %s2164_s10 = scalar_lea.hbm %s2230_s17, %s808_s29  ;;  %p1506_p9 = pneg %p1505_p8 }
 0x280   : > { %p1512_p12 = por %p1511_p11, %p1510_p10 }
 0x282   : > { %p1513_p13 = pnand %p1512_p12, %p1506_p9 }
 0x284   : > { %1516 = shalt.err (!%p1513_p13)
}
 0x285   : > { %s1517_s22 = scalar_lea.hbm %s2164_s10, 128  ;;  %s1521_s13 = scalar_lea.hbm %s2230_s17, 256 }
 0x286   : > { %p1518_p0 = scmp.ne.s32.totalorder %s2164_s10, %s1517_s22  ;;  %p1522_p4 = scmp.lt.u32.totalorder %s2164_s10, %s2230_s17 }
 0x287   : > { %p1523_p6 = scmp.lt.u32.totalorder %s1521_s13, %s1517_s22  ;;  %p1525_p8 = scmp.lt.u32.totalorder %s1517_s22, %s2164_s10 }
 0x288   : > { %p1519_p1 = pnand %p1518_p0, %p1713_p3 }
 0x289   : > { %p1524_p7 = por %p1523_p6, %p1522_p4 }
 0x28a   : > { %p1520_p2 = pneg %p1519_p1 }
 0x28b   : > { %p1526_p9 = por %p1525_p8, %p1524_p7 }
 0x28d   : > { %p1527_p10 = pnand %p1526_p9, %p1520_p2 }
 0x28f   : > { %1530 = shalt.err (!%p1527_p10)
}
 0x290   : > { %835 = dma.vmem_to_hbm [thread:$0]  (%p1713_p3), %s2166_s1, 128, %s2164_s10, %s507_s6  }
 0x291 PF: > { %s2232_s23 = sld [smem:[#allocation88_spill]]  ;;  %p841_p11 = scmp.ge.s32.totalorder %s1607_s12, 1 }
 0x293   : > { %p838_p12 = pnand %p841_p11, %p1717_p5 }
 0x297   : > { %s532_s24 = sand.u32 1, %s2232_s23  }
 0x298   : > { %s533_s8 = scalar_lea.sflag [#allocation11], %s532_s24 }
 0x299   : > { %1594 = dma.done.wait (!%p838_p12), %s533_s8, 128  }
 0x29a   : > { %1596 = vsyncadd (!%p838_p12), %s533_s8, 4294967168  ;;  %s2234_s12 = sld [smem:[#allocation89_spill]]  ;;  %s2235_s26 = sld [smem:[#allocation90_spill]] }
 0x29b   : > { %s2236_s2 = smov %s1603_s11 }
 0x2a0   : > { %p27_p13 = scmp.ge.s32.totalorder %s2234_s12, 3   ;;  %s2237_s11 = smov %s2235_s26 }
 0x2a2   :  { %29 = sbr.rel (!%p27_p13) target bundleno = 36 (0x24), region = 231 }
 0x2a9   :  { %538 = vsyncpa [#allocation11], 1 }
 0x2aa   :  { %540 = vsyncpa [#allocation11 + $0x1], 1 }
 0x2ab   :  { %541 = vsyncmov [#allocation5] }
 0x2ae   :  { %s542_s16 = vpop.sfrf %541 }
 0x2af   :  { %p811_p3 = scmp.ne.s32.totalorder %s542_s16, 0 }
 0x2b1   :  { %546 = shalt.err (%p811_p3)  }
 0x2b2   :  { %548 = vsyncmov [#allocation5 + $0x1] }
 0x2b5   :  { %s549_s28 = vpop.sfrf %548 }
 0x2b6   :  { %p812_p5 = scmp.ne.s32.totalorder %s549_s28, 0 }
 0x2b8   :  { %553 = shalt.err (%p812_p5)  }
 0x2b9   :  { %555 = vsyncmov [#allocation5 + $0x2] }
 0x2bc   :  { %s556_s15 = vpop.sfrf %555 }
 0x2bd   :  { %p813_p0 = scmp.ne.s32.totalorder %s556_s15, 0 }
 0x2bf   :  { %560 = shalt.err (%p813_p0)  }
 0x2c0   :  { %562 = vsyncmov [#allocation5 + $0x3] }
 0x2c3   :  { %s563_s7 = vpop.sfrf %562 }
 0x2c4   :  { %p814_p1 = scmp.ne.s32.totalorder %s563_s7, 0 }
 0x2c6   :  { %567 = shalt.err (%p814_p1)  }
 0x2c7   :  { %569 = vsyncmov [#allocation5 + $0x4] }
 0x2ca   :  { %s570_s12 = vpop.sfrf %569 }
 0x2cb   :  { %p815_p2 = scmp.ne.s32.totalorder %s570_s12, 0 }
 0x2cd   :  { %574 = shalt.err (%p815_p2)  }
 0x2ce   :  { %576 = vsyncmov [#allocation5 + $0x5] }
 0x2d1   :  { %s577_s3 = vpop.sfrf %576 }
 0x2d2   :  { %p816_p4 = scmp.ne.s32.totalorder %s577_s3, 0 }
 0x2d4   :  { %581 = shalt.err (%p816_p4)  }
 0x2d5   :  { %583 = vsyncmov [#allocation5 + $0x6] }
 0x2d8   :  { %s584_s4 = vpop.sfrf %583 }
 0x2d9   :  { %p817_p6 = scmp.ne.s32.totalorder %s584_s4, 0 }
 0x2db   :  { %588 = shalt.err (%p817_p6)  }
 0x2dc   :  { %590 = vsyncmov [#allocation5 + $0x7] }
 0x2df   :  { %s591_s11 = vpop.sfrf %590 }
 0x2e0   :  { %p818_p7 = scmp.ne.s32.totalorder %s591_s11, 0 }
 0x2e2   :  { %595 = shalt.err (%p818_p7)  }
 0x2e3   :  { %597 = vsyncmov [#allocation5 + $0x8] }
 0x2e6   :  { %s598_s29 = vpop.sfrf %597 }
 0x2e7   :  { %p819_p8 = scmp.ne.s32.totalorder %s598_s29, 0 }
 0x2e9   :  { %602 = shalt.err (%p819_p8)  }
 0x2ea   :  { %604 = vsyncmov [#allocation5 + $0x9] }
 0x2ed   :  { %s605_s1 = vpop.sfrf %604 }
 0x2ee   :  { %p820_p9 = scmp.ne.s32.totalorder %s605_s1, 0 }
 0x2f0   :  { %609 = shalt.err (%p820_p9)  }
 0x2f1   :  { %611 = vsyncmov [#allocation5 + $0xa] }
 0x2f4   :  { %s612_s20 = vpop.sfrf %611 }
 0x2f5   :  { %p821_p10 = scmp.ne.s32.totalorder %s612_s20, 0 }
 0x2f7   :  { %616 = shalt.err (%p821_p10)  }
 0x2f8   :  { %618 = vsyncmov [#allocation5 + $0xb] }
 0x2fb   :  { %s619_s0 = vpop.sfrf %618 }
 0x2fc   :  { %p822_p11 = scmp.ne.s32.totalorder %s619_s0, 0 }
 0x2fe   :  { %623 = shalt.err (%p822_p11)  }
 0x2ff   :  { %625 = vsyncmov [#allocation5 + $0xc] }
 0x302   :  { %s626_s17 = vpop.sfrf %625 }
 0x303   :  { %p823_p12 = scmp.ne.s32.totalorder %s626_s17, 0 }
 0x305   :  { %630 = shalt.err (%p823_p12)  }
 0x306   :  { %632 = vsyncmov [#allocation5 + $0xd] }
 0x309   :  { %s633_s10 = vpop.sfrf %632 }
 0x30a   :  { %p824_p13 = scmp.ne.s32.totalorder %s633_s10, 0 }
 0x30c   :  { %637 = shalt.err (%p824_p13)  }
 0x30d   :  { %639 = vsyncmov [#allocation5 + $0xe] }
 0x310   :  { %s640_s30 = vpop.sfrf %639 }
 0x311   :  { %p825_p3 = scmp.ne.s32.totalorder %s640_s30, 0 }
 0x313   :  { %644 = shalt.err (%p825_p3)  }
 0x314   :  { %646 = vsyncmov [#allocation5 + $0xf] }
 0x317   :  { %s647_s6 = vpop.sfrf %646 }
 0x318   :  { %p826_p5 = scmp.ne.s32.totalorder %s647_s6, 0 }
 0x31a   :  { %651 = shalt.err (%p826_p5)  }
 0x31b   :  { %653 = vsyncmov [#allocation5 + $0x10] }
 0x31e   :  { %s654_s5 = vpop.sfrf %653 }
 0x31f   :  { %p827_p0 = scmp.ne.s32.totalorder %s654_s5, 0 }
 0x321   :  { %658 = shalt.err (%p827_p0)  }
 0x322   :  { %660 = vsyncmov [#allocation5 + $0x11] }
 0x325   :  { %s661_s21 = vpop.sfrf %660 }
 0x326   :  { %p828_p1 = scmp.ne.s32.totalorder %s661_s21, 0 }
 0x328   :  { %665 = shalt.err (%p828_p1)  }
 0x329   :  { %667 = vsyncmov [#allocation5 + $0x12] }
 0x32c   :  { %s668_s14 = vpop.sfrf %667 }
 0x32d   :  { %p829_p2 = scmp.ne.s32.totalorder %s668_s14, 0 }
 0x32f   :  { %672 = shalt.err (%p829_p2)  }
 0x330   :  { %674 = vsyncmov [#allocation5 + $0x13] }
 0x333   :  { %s675_s19 = vpop.sfrf %674 }
 0x334   :  { %p830_p4 = scmp.ne.s32.totalorder %s675_s19, 0 }
 0x336   :  { %679 = shalt.err (%p830_p4)  }
 0x337   :  { %681 = vsyncmov [#allocation5 + $0x14] }
 0x33a   :  { %s682_s22 = vpop.sfrf %681 }
 0x33b   :  { %p831_p6 = scmp.ne.s32.totalorder %s682_s22, 0 }
 0x33d   :  { %686 = shalt.err (%p831_p6)  }
 0x33e   :  { %688 = vsyncmov [#allocation5 + $0x15] }
 0x341   :  { %s689_s2 = vpop.sfrf %688 }
 0x342   :  { %p832_p7 = scmp.ne.s32.totalorder %s689_s2, 0 }
 0x344   :  { %693 = shalt.err (%p832_p7)  }
 0x345   :  { %695 = vsyncmov [#allocation5 + $0x16] }
 0x348   :  { %s696_s9 = vpop.sfrf %695 }
 0x349   :  { %p833_p8 = scmp.ne.s32.totalorder %s696_s9, 0 }
 0x34b   :  { %700 = shalt.err (%p833_p8)  }
 0x34c   :  { %702 = vsyncmov [#allocation5 + $0x17] }
 0x34f   :  { %s703_s13 = vpop.sfrf %702 }
 0x350   :  { %p834_p9 = scmp.ne.s32.totalorder %s703_s13, 0 }
 0x352   :  { %707 = shalt.err (%p834_p9)  }

</bundles_post_ra>
